<compile_context>
chip_gen: v5e
topology: v5e:2x2
jax: 0.10.0
libtpu: 0.0.40
codegen_flags: <defaults>
</compile_context>

<pallas_src>
import math
from functools import partial

import jax
import jax.numpy as jnp
from jax.experimental import pallas as pl
from jax.experimental.pallas import tpu as pltpu

NEG = -1e30  # large negative (f32) for masked attention logits


# ----------------------------------------------------------------------------
# Fused kernel: positional-encoding add + all encoder layers
# ----------------------------------------------------------------------------
def fused_encoder_kernel(x_ref, pad_ref, pe_ref,
                         wqkv_ref, bqkv_ref, wo_ref, bo_ref,
                         g1_ref, be1_ref,
                         w1_ref, b1_ref, w2_ref, b2_ref,
                         g2_ref, be2_ref,
                         o_ref, acc_ref, attn_ref, mask_ref, *, n_head):
    """One batch tile for one layer; acc_ref carries activations across layer iterations.

    x_ref:    (Bt, L, D)      input activations (only consumed at layer 0)
    pad_ref:  (Bt, 1, L) i32  key padding mask (nonzero = padded / ignored key)
    pe_ref:   (L, D)          sinusoidal positional encoding
    weights:  layer-indexed blocks, pre-transposed so y = x @ W + b (matmul weights bf16)
    acc_ref:  (Bt*L, D) f32   VMEM-resident activation carry across layers
    attn_ref: (Bt*L, D) f32   per-layer head-output slab (overwritten every layer)
    mask_ref: (Bt, L, L) f32  additive mask bias (NEG on masked logits), built at layer 0
    """
    layer = pl.program_id(1)
    n_layers = pl.num_programs(1)
    Bt, L, D = x_ref.shape
    dh = D // n_head

    # ---- layer 0: init activation carry and the combined additive mask ------
    @pl.when(layer == 0)
    def _():
        xin = x_ref[...].astype(jnp.float32) + pe_ref[...][None, :, :]
        acc_ref[...] = xin.reshape(Bt * L, D)
        row = jax.lax.broadcasted_iota(jnp.int32, (L, L), 0)
        col = jax.lax.broadcasted_iota(jnp.int32, (L, L), 1)
        causal = (col > row)[None, :, :]                       # (1, L, L)
        pad = pad_ref[...] > 0                                 # (Bt, 1, L)
        masked = jnp.logical_or(causal, pad)                   # (Bt, L, L)
        mask_ref[...] = jnp.where(masked, NEG, 0.0).astype(jnp.float32)

    x = acc_ref[...]                                            # (Bt*L, D) f32
    x_bf = x.astype(jnp.bfloat16)

    # ---- fused QKV projection over the whole batch tile (one big matmul) -----
    qkv_f32 = jnp.dot(x_bf, wqkv_ref[0],
                      preferred_element_type=jnp.float32) + bqkv_ref[0]
    qkv = qkv_f32.astype(jnp.bfloat16)                          # (Bt*L, 3D) bf16
    # 1/sqrt(d_head) already folded into the q columns of wqkv/bqkv at init.

    mask_bias = mask_ref[...]                                   # (Bt, L, L) f32, hoisted

    # ---- attention: static loop over heads only; batched-over-Bt einsums -----
    for h in range(n_head):
        qh = qkv[:, h * dh:(h + 1) * dh].reshape(Bt, L, dh)             # (Bt, L, dh)
        kh = qkv[:, D + h * dh:D + (h + 1) * dh].reshape(Bt, L, dh)
        vh = qkv[:, 2 * D + h * dh:2 * D + (h + 1) * dh].reshape(Bt, L, dh)
        s = jnp.einsum('bqd,bkd->bqk', qh, kh,
                       preferred_element_type=jnp.float32)              # (Bt, L, L)
        s = s + mask_bias
        s = s - jnp.max(s, axis=-1, keepdims=True)
        p = jnp.exp(s)
        p = p * pl.reciprocal(jnp.sum(p, axis=-1, keepdims=True), approx=True)
        ctx = jnp.einsum('bqk,bkd->bqd', p.astype(jnp.bfloat16), vh,
                         preferred_element_type=jnp.float32)            # (Bt, L, dh)
        attn_ref[:, h * dh:(h + 1) * dh] = ctx.reshape(Bt * L, dh)

    # single output projection over the whole tile
    attn = jnp.dot(attn_ref[...].astype(jnp.bfloat16), wo_ref[0],
                   preferred_element_type=jnp.float32) + bo_ref[0]      # (Bt*L, D)

    def layer_norm(y, g, b):
        mu = jnp.mean(y, axis=-1, keepdims=True)
        var = jnp.mean(jnp.square(y - mu), axis=-1, keepdims=True)
        return (y - mu) * jax.lax.rsqrt(var + 1e-5) * g + b

    # post-norm residual 1
    x1 = layer_norm(x + attn, g1_ref[0], be1_ref[0])

    # ---- feed forward (ReLU), batch folded into M -----------------------------
    h1 = jnp.maximum(
        jnp.dot(x1.astype(jnp.bfloat16), w1_ref[0],
                preferred_element_type=jnp.float32) + b1_ref[0], 0.0)
    h2 = jnp.dot(h1.astype(jnp.bfloat16), w2_ref[0],
                 preferred_element_type=jnp.float32) + b2_ref[0]
    x2 = layer_norm(x1 + h2, g2_ref[0], be2_ref[0])

    # carry is only needed by the NEXT layer; skip the dead store on the last one
    @pl.when(layer != n_layers - 1)
    def _():
        acc_ref[...] = x2

    @pl.when(layer == n_layers - 1)
    def _():
        o_ref[...] = x2.reshape(Bt, L, D).astype(o_ref.dtype)


# ----------------------------------------------------------------------------
# Per-generation budgeting helpers
# ----------------------------------------------------------------------------
def _device_profile():
    """Returns (vmem_limit_cap_bytes, max_tile_rows, num_tensorcores)."""
    try:
        kind = jax.devices()[0].device_kind.lower()
    except Exception:
        kind = ""
    if "v7" in kind or "tpu7" in kind:
        # v7x: 64 MiB VMEM per TC -> leave headroom; 2 TCs/chip.
        return 50 * 1024 * 1024, 512, 2
    # v5e / v6e: 128 MiB VMEM, single TC.
    return 100 * 1024 * 1024, 2048, 1


def _vmem_estimate(bt, L, D, d_hidden, per_layer_w_bytes):
    rows = bt * L
    scratch = rows * D * 4 * 2 + bt * L * L * 4                    # acc + attn + mask
    io_blocks = 2 * 2 * rows * D * 4 + 2 * bt * L * 4 + 2 * L * D * 4
    weights = 2 * per_layer_w_bytes                                # double-buffered layer
    temps = rows * (3 * D * 6 + d_hidden * 4 + 4 * D * 4) + bt * L * L * 8
    return scratch + io_blocks + weights + temps


def _pick_block_b(B, L, D, d_hidden, per_layer_w_bytes, vmem_cap, max_rows, n_cores):
    best = 1
    for cand in range(B, 0, -1):
        if B % cand:
            continue
        if n_cores > 1 and B >= 2 and cand > B // 2:
            continue                      # guarantee >=2 batch tiles for the 2nd TC
        if cand * L > max_rows:
            continue
        if _vmem_estimate(cand, L, D, d_hidden, per_layer_w_bytes) > 0.8 * vmem_cap:
            continue
        best = cand
        break
    return best


# ----------------------------------------------------------------------------
# Wrapper
# ----------------------------------------------------------------------------
def product_transformer_forward(x, padding_mask, pe, stacked, n_head, *, block_b=None):
    """x: [B, L, D] f32, padding_mask: [B, L] bool (True = pad), stacked: dict of
    per-layer weights stacked along a leading n_layers axis."""
    B, L, D = x.shape
    assert D % n_head == 0
    n_layers = stacked["wqkv"].shape[0]
    d_hidden = stacked["w1"].shape[2]

    per_layer_w_bytes = sum(int(v.size // n_layers) * v.dtype.itemsize
                            for v in stacked.values())
    vmem_cap, max_rows, n_cores = _device_profile()

    if block_b is None:
        block_b = _pick_block_b(B, L, D, d_hidden, per_layer_w_bytes,
                                vmem_cap, max_rows, n_cores)
    assert B % block_b == 0

    pad_i = padding_mask.astype(jnp.int32).reshape(B, 1, L)
    pe_l = pe[:L].astype(jnp.float32)

    grid = (B // block_b, n_layers)

    in_specs = [
        pl.BlockSpec((block_b, L, D), lambda b, l: (b, 0, 0)),     # x
        pl.BlockSpec((block_b, 1, L), lambda b, l: (b, 0, 0)),     # key padding mask (i32)
        pl.BlockSpec((L, D), lambda b, l: (0, 0)),                 # positional encoding
        pl.BlockSpec((1, D, 3 * D), lambda b, l: (l, 0, 0)),       # wqkv
        pl.BlockSpec((1, 1, 3 * D), lambda b, l: (l, 0, 0)),       # bqkv
        pl.BlockSpec((1, D, D), lambda b, l: (l, 0, 0)),           # wo
        pl.BlockSpec((1, 1, D), lambda b, l: (l, 0, 0)),           # bo
        pl.BlockSpec((1, 1, D), lambda b, l: (l, 0, 0)),           # norm1 gamma
        pl.BlockSpec((1, 1, D), lambda b, l: (l, 0, 0)),           # norm1 beta
        pl.BlockSpec((1, D, d_hidden), lambda b, l: (l, 0, 0)),    # w1
        pl.BlockSpec((1, 1, d_hidden), lambda b, l: (l, 0, 0)),    # b1
        pl.BlockSpec((1, d_hidden, D), lambda b, l: (l, 0, 0)),    # w2
        pl.BlockSpec((1, 1, D), lambda b, l: (l, 0, 0)),           # b2
        pl.BlockSpec((1, 1, D), lambda b, l: (l, 0, 0)),           # norm2 gamma
        pl.BlockSpec((1, 1, D), lambda b, l: (l, 0, 0)),           # norm2 beta
    ]
    out_spec = pl.BlockSpec((block_b, L, D), lambda b, l: (b, 0, 0))

    est = _vmem_estimate(block_b, L, D, d_hidden, per_layer_w_bytes)
    vmem_limit = int(min(vmem_cap, max(32 * 1024 * 1024, 2 * est)))

    flops_per_layer = (2 * B * L * (3 * D * D + D * D + 2 * D * d_hidden)
                       + 4 * B * L * L * D)
    cost = pl.CostEstimate(
        flops=int(n_layers * flops_per_layer),
        transcendentals=int(n_layers * B * n_head * L * L),
        bytes_accessed=int(2 * x.size * 4 + pad_i.size * 4 + L * D * 4
                           + sum(int(v.size) * v.dtype.itemsize for v in stacked.values())),
    )

    kernel = partial(fused_encoder_kernel, n_head=n_head)
    return pl.pallas_call(
        kernel,
        out_shape=jax.ShapeDtypeStruct((B, L, D), x.dtype),
        grid_spec=pltpu.PrefetchScalarGridSpec(
            num_scalar_prefetch=0,
            grid=grid,
            in_specs=in_specs,
            out_specs=out_spec,
            scratch_shapes=[
                pltpu.VMEM((block_b * L, D), jnp.float32),     # activation carry
                pltpu.VMEM((block_b * L, D), jnp.float32),     # per-layer head outputs
                pltpu.VMEM((block_b, L, L), jnp.float32),      # additive mask bias
            ],
        ),
        compiler_params=pltpu.CompilerParams(
            dimension_semantics=("parallel", "arbitrary"),
            vmem_limit_bytes=vmem_limit,
        ),
        cost_estimate=cost,
    )(x, pad_i, pe_l,
      stacked["wqkv"], stacked["bqkv"], stacked["wo"], stacked["bo"],
      stacked["g1"], stacked["be1"],
      stacked["w1"], stacked["b1"], stacked["w2"], stacked["b2"],
      stacked["g2"], stacked["be2"])


# ----------------------------------------------------------------------------
# Parameter construction (deterministic)
# ----------------------------------------------------------------------------
def make_sinusoidal_pe(max_len, d_model):
    pos = jnp.arange(max_len, dtype=jnp.float32)[:, None]
    div = jnp.exp(jnp.arange(0, d_model, 2, dtype=jnp.float32)
                  * (-math.log(10000.0) / d_model))
    pe = jnp.zeros((max_len, d_model), jnp.float32)
    pe = pe.at[:, 0::2].set(jnp.sin(pos * div))
    pe = pe.at[:, 1::2].set(jnp.cos(pos * div))
    return pe


def init_layer_params(key, d_model, d_hidden, n_head):
    ks = jax.random.split(key, 4)
    s = 0.02
    dh = d_model // n_head
    qk_scale = 1.0 / math.sqrt(dh)
    # weights pre-transposed: y = x @ W + b ; matmul weights stored in bf16
    wqkv = jax.random.normal(ks[0], (d_model, 3 * d_model), jnp.float32) * s
    bqkv = jnp.zeros((1, 3 * d_model), jnp.float32)
    # fold 1/sqrt(d_head) into the q projection (zero kernel cost)
    wqkv = wqkv.at[:, :d_model].multiply(qk_scale)
    bqkv = bqkv.at[:, :d_model].multiply(qk_scale)
    return dict(
        wqkv=wqkv.astype(jnp.bfloat16),
        bqkv=bqkv,
        wo=(jax.random.normal(ks[1], (d_model, d_model), jnp.float32) * s).astype(jnp.bfloat16),
        bo=jnp.zeros((1, d_model), jnp.float32),
        g1=jnp.ones((1, d_model), jnp.float32),
        be1=jnp.zeros((1, d_model), jnp.float32),
        w1=(jax.random.normal(ks[2], (d_model, d_hidden), jnp.float32) * s).astype(jnp.bfloat16),
        b1=jnp.zeros((1, d_hidden), jnp.float32),
        w2=(jax.random.normal(ks[3], (d_hidden, d_model), jnp.float32) * s).astype(jnp.bfloat16),
        b2=jnp.zeros((1, d_model), jnp.float32),
        g2=jnp.ones((1, d_model), jnp.float32),
        be2=jnp.zeros((1, d_model), jnp.float32),
    )


def stack_layer_params(layer_params):
    return {k: jnp.stack([p[k] for p in layer_params], axis=0)
            for k in layer_params[0]}


# ----------------------------------------------------------------------------
if __name__ == "__main__":
    # small config consistent with the module (d_model % n_head == 0)
    B, L = 4, 8
    d_model, n_head, d_hidden, n_layers = 32, 4, 64, 2

    key = jax.random.PRNGKey(0)
    k_x, k_p = jax.random.split(key)
    x = jax.random.normal(k_x, (B, L, d_model), jnp.float32)

    # padding mask: True = padded/ignored key positions
    lengths = jnp.array([L, 5, 8, 3])
    padding_mask = jnp.arange(L)[None, :] >= lengths[:, None]   # [B, L] bool

    pe = make_sinusoidal_pe(max_len=64, d_model=d_model)
    layer_keys = jax.random.split(k_p, n_layers)
    layer_params = [init_layer_params(layer_keys[i], d_model, d_hidden, n_head)
                    for i in range(n_layers)]
    stacked = stack_layer_params(layer_params)

    # block_b=2 exercises the multi-batch-tile carry path (2 batch tiles x 2 layers)
    out = product_transformer_forward(x, padding_mask, pe, stacked, n_head, block_b=2)
    out = jax.block_until_ready(out)
    assert out.shape == (B, L, d_model)
    assert bool(jnp.all(jnp.isfinite(out)))
    print("KERNEL_OK")
</pallas_src>

<mosaic_0001>
module attributes {stable_mosaic.version = 11 : i64} {
  func.func @fused_encoder_kernel(%arg0: i32, %arg1: i32, %arg2: memref<2x8x32xf32, #tpu.memory_space<vmem>>, %arg3: memref<2x1x8xi32, #tpu.memory_space<vmem>>, %arg4: memref<8x32xf32, #tpu.memory_space<vmem>>, %arg5: memref<1x32x96xbf16, #tpu.memory_space<vmem>>, %arg6: memref<1x1x96xf32, #tpu.memory_space<vmem>>, %arg7: memref<1x32x32xbf16, #tpu.memory_space<vmem>>, %arg8: memref<1x1x32xf32, #tpu.memory_space<vmem>>, %arg9: memref<1x1x32xf32, #tpu.memory_space<vmem>>, %arg10: memref<1x1x32xf32, #tpu.memory_space<vmem>>, %arg11: memref<1x32x64xbf16, #tpu.memory_space<vmem>>, %arg12: memref<1x1x64xf32, #tpu.memory_space<vmem>>, %arg13: memref<1x64x32xbf16, #tpu.memory_space<vmem>>, %arg14: memref<1x1x32xf32, #tpu.memory_space<vmem>>, %arg15: memref<1x1x32xf32, #tpu.memory_space<vmem>>, %arg16: memref<1x1x32xf32, #tpu.memory_space<vmem>>, %arg17: memref<2x8x32xf32, #tpu.memory_space<vmem>>, %arg18: memref<16x32xf32, #tpu.memory_space<vmem>>, %arg19: memref<16x32xf32, #tpu.memory_space<vmem>>, %arg20: memref<2x8x8xf32, #tpu.memory_space<vmem>>) attributes {dimension_semantics = [#tpu.dimension_semantics<parallel>, #tpu.dimension_semantics<arbitrary>], iteration_bounds = array<i64: 2, 2>, scalar_prefetch = 0 : i64, scratch_operands = 3 : i64, tpu.core_type = #tpu.core_type<tc>, window_params = [{transform_indices = @transform_0, window_bounds = array<i64: 2, 8, 32>}, {transform_indices = @transform_1, window_bounds = array<i64: 2, 1, 8>}, {pipeline_mode = #tpu.pipeline_mode<synchronous>, transform_indices = @transform_2, window_bounds = array<i64: 8, 32>}, {transform_indices = @transform_3, window_bounds = array<i64: 1, 32, 96>}, {transform_indices = @transform_4, window_bounds = array<i64: 1, 1, 96>}, {transform_indices = @transform_5, window_bounds = array<i64: 1, 32, 32>}, {transform_indices = @transform_6, window_bounds = array<i64: 1, 1, 32>}, {transform_indices = @transform_7, window_bounds = array<i64: 1, 1, 32>}, {transform_indices = @transform_8, window_bounds = array<i64: 1, 1, 32>}, {transform_indices = @transform_9, window_bounds = array<i64: 1, 32, 64>}, {transform_indices = @transform_10, window_bounds = array<i64: 1, 1, 64>}, {transform_indices = @transform_11, window_bounds = array<i64: 1, 64, 32>}, {transform_indices = @transform_12, window_bounds = array<i64: 1, 1, 32>}, {transform_indices = @transform_13, window_bounds = array<i64: 1, 1, 32>}, {transform_indices = @transform_14, window_bounds = array<i64: 1, 1, 32>}, {transform_indices = @transform_15, window_bounds = array<i64: 2, 8, 32>}]} {
    %c0_i32 = arith.constant 0 : i32
    %0 = arith.cmpi eq, %arg1, %c0_i32 : i32
    %1 = arith.extui %0 : i1 to i32
    %c0_i32_0 = arith.constant 0 : i32
    %2 = arith.cmpi ne, %1, %c0_i32_0 : i32
    scf.if %2 {
      %c0_81 = arith.constant 0 : index
      %c0_82 = arith.constant 0 : index
      %c0_83 = arith.constant 0 : index
      %189 = vector.load %arg2[%c0_81, %c0_82, %c0_83] : memref<2x8x32xf32, #tpu.memory_space<vmem>>, vector<2x8x32xf32>
      %c0_84 = arith.constant 0 : index
      %c0_85 = arith.constant 0 : index
      %190 = vector.load %arg4[%c0_84, %c0_85] : memref<8x32xf32, #tpu.memory_space<vmem>>, vector<8x32xf32>
      %191 = vector.shape_cast %190 : vector<8x32xf32> to vector<1x8x32xf32>
      %192 = vector.broadcast %191 : vector<1x8x32xf32> to vector<2x8x32xf32>
      %193 = arith.addf %189, %192 : vector<2x8x32xf32>
      %194 = vector.shape_cast %193 : vector<2x8x32xf32> to vector<16x32xf32>
      %c0_86 = arith.constant 0 : index
      %c0_87 = arith.constant 0 : index
      %195 = vector.load %arg18[%c0_86, %c0_87] : memref<16x32xf32, #tpu.memory_space<vmem>>, vector<16x32xf32>
      tpu.vector_store %arg18[%c0_86, %c0_87], %194 {strides = array<i32>} : memref<16x32xf32, #tpu.memory_space<vmem>>, vector<16x32xf32>,
      %196 = tpu.iota {dimensions = array<i32: 0>} : vector<8x8xi32>
      %197 = tpu.iota {dimensions = array<i32: 1>} : vector<8x8xi32>
      %198 = arith.cmpi sgt, %197, %196 : vector<8x8xi32>
      %199 = vector.shape_cast %198 : vector<8x8xi1> to vector<1x8x8xi1>
      %c0_88 = arith.constant 0 : index
      %c0_89 = arith.constant 0 : index
      %c0_90 = arith.constant 0 : index
      %200 = vector.load %arg3[%c0_88, %c0_89, %c0_90] : memref<2x1x8xi32, #tpu.memory_space<vmem>>, vector<2x1x8xi32>
      %c0_i32_91 = arith.constant 0 : i32
      %201 = vector.broadcast %c0_i32_91 : i32 to vector<2x1x8xi32>
      %202 = arith.cmpi sgt, %200, %201 : vector<2x1x8xi32>
      %203 = vector.broadcast %199 : vector<1x8x8xi1> to vector<2x8x8xi1>
      %204 = vector.broadcast %202 : vector<2x1x8xi1> to vector<2x8x8xi1>
      %205 = arith.ori %203, %204 : vector<2x8x8xi1>
      %cst_92 = arith.constant -1.000000e+30 : f32
      %cst_93 = arith.constant 0.000000e+00 : f32
      %206 = vector.broadcast %cst_92 : f32 to vector<2x8x8xf32>
      %207 = vector.broadcast %cst_93 : f32 to vector<2x8x8xf32>
      %208 = arith.select %205, %206, %207 : vector<2x8x8xi1>, vector<2x8x8xf32>
      %c0_94 = arith.constant 0 : index
      %c0_95 = arith.constant 0 : index
      %c0_96 = arith.constant 0 : index
      %209 = vector.load %arg20[%c0_94, %c0_95, %c0_96] : memref<2x8x8xf32, #tpu.memory_space<vmem>>, vector<2x8x8xf32>
      tpu.vector_store %arg20[%c0_94, %c0_95, %c0_96], %208 {strides = array<i32>} : memref<2x8x8xf32, #tpu.memory_space<vmem>>, vector<2x8x8xf32>,
    } else {
    }
    %c0 = arith.constant 0 : index
    %c0_1 = arith.constant 0 : index
    %3 = vector.load %arg18[%c0, %c0_1] : memref<16x32xf32, #tpu.memory_space<vmem>>, vector<16x32xf32>
    %4 = arith.truncf %3 : vector<16x32xf32> to vector<16x32xbf16>
    %c0_2 = arith.constant 0 : index
    %c0_3 = arith.constant 0 : index
    %c0_4 = arith.constant 0 : index
    %5 = vector.load %arg5[%c0_2, %c0_3, %c0_4] : memref<1x32x96xbf16, #tpu.memory_space<vmem>>, vector<1x32x96xbf16>
    %6 = vector.shape_cast %5 : vector<1x32x96xbf16> to vector<32x96xbf16>
    %cst = arith.constant dense<0.000000e+00> : vector<16x96xf32>
    %7 = tpu.matmul %4, %6, %cst {dimension_numbers = #tpu.dot_dimension_numbers<[1], [0], [0], [1], [0, 0, 1, 1], [], []>} : vector<16x32xbf16>, vector<32x96xbf16>, vector<16x96xf32> -> vector<16x96xf32>
    %c0_5 = arith.constant 0 : index
    %c0_6 = arith.constant 0 : index
    %c0_7 = arith.constant 0 : index
    %8 = vector.load %arg6[%c0_5, %c0_6, %c0_7] : memref<1x1x96xf32, #tpu.memory_space<vmem>>, vector<1x1x96xf32>
    %9 = vector.shape_cast %8 : vector<1x1x96xf32> to vector<1x96xf32>
    %10 = vector.broadcast %9 : vector<1x96xf32> to vector<16x96xf32>
    %11 = arith.addf %7, %10 : vector<16x96xf32>
    %12 = arith.truncf %11 : vector<16x96xf32> to vector<16x96xbf16>
    %c0_8 = arith.constant 0 : index
    %c0_9 = arith.constant 0 : index
    %c0_10 = arith.constant 0 : index
    %13 = vector.load %arg20[%c0_8, %c0_9, %c0_10] : memref<2x8x8xf32, #tpu.memory_space<vmem>>, vector<2x8x8xf32>
    %14 = vector.extract_strided_slice %12 {offsets = [0, 0], sizes = [16, 8], strides = [1, 1]} : vector<16x96xbf16> to vector<16x8xbf16>
    %15 = vector.shape_cast %14 : vector<16x8xbf16> to vector<2x8x8xbf16>
    %16 = vector.extract_strided_slice %12 {offsets = [0, 32], sizes = [16, 8], strides = [1, 1]} : vector<16x96xbf16> to vector<16x8xbf16>
    %17 = vector.shape_cast %16 : vector<16x8xbf16> to vector<2x8x8xbf16>
    %18 = vector.extract_strided_slice %12 {offsets = [0, 64], sizes = [16, 8], strides = [1, 1]} : vector<16x96xbf16> to vector<16x8xbf16>
    %19 = vector.shape_cast %18 : vector<16x8xbf16> to vector<2x8x8xbf16>
    "tpu.trace_start"() <{level = 10 : i32, message = "bqd,bkd->bqk"}> : () -> ()
    %cst_11 = arith.constant dense<0.000000e+00> : vector<2x8x8xf32>
    %20 = tpu.matmul %15, %17, %cst_11 {dimension_numbers = #tpu.dot_dimension_numbers<[2], [2], [1], [1], [0, 0, 0, 1, 1, 1], [0], [0]>} : vector<2x8x8xbf16>, vector<2x8x8xbf16>, vector<2x8x8xf32> -> vector<2x8x8xf32>
    "tpu.trace_stop"() : () -> ()
    %21 = arith.addf %20, %13 : vector<2x8x8xf32>
    %cst_12 = arith.constant dense<0xFF800000> : vector<2x8xf32>
    %22 = vector.multi_reduction <maximumf>, %21, %cst_12 [2] : vector<2x8x8xf32> to vector<2x8xf32>
    %23 = vector.shape_cast %22 : vector<2x8xf32> to vector<2x8x1xf32>
    %24 = vector.broadcast %23 : vector<2x8x1xf32> to vector<2x8x8xf32>
    %25 = arith.subf %21, %24 : vector<2x8x8xf32>
    %26 = math.exp %25 : vector<2x8x8xf32>
    %cst_13 = arith.constant dense<0.000000e+00> : vector<2x8xf32>
    %27 = vector.multi_reduction <add>, %26, %cst_13 [2] : vector<2x8x8xf32> to vector<2x8xf32>
    %28 = vector.shape_cast %27 : vector<2x8xf32> to vector<2x8x1xf32>
    %29 = tpu.reciprocal %28 {approx = true} : vector<2x8x1xf32> -> vector<2x8x1xf32>
    %30 = vector.broadcast %29 : vector<2x8x1xf32> to vector<2x8x8xf32>
    %31 = arith.mulf %26, %30 : vector<2x8x8xf32>
    %32 = arith.truncf %31 : vector<2x8x8xf32> to vector<2x8x8xbf16>
    "tpu.trace_start"() <{level = 10 : i32, message = "bqk,bkd->bqd"}> : () -> ()
    %cst_14 = arith.constant dense<0.000000e+00> : vector<2x8x8xf32>
    %33 = tpu.matmul %32, %19, %cst_14 {dimension_numbers = #tpu.dot_dimension_numbers<[2], [1], [1], [2], [0, 0, 0, 1, 1, 2], [0], [0]>} : vector<2x8x8xbf16>, vector<2x8x8xbf16>, vector<2x8x8xf32> -> vector<2x8x8xf32>
    "tpu.trace_stop"() : () -> ()
    %34 = vector.shape_cast %33 : vector<2x8x8xf32> to vector<16x8xf32>
    %c0_15 = arith.constant 0 : index
    %c0_16 = arith.constant 0 : index
    %35 = vector.load %arg19[%c0_15, %c0_16] : memref<16x32xf32, #tpu.memory_space<vmem>>, vector<16x8xf32>
    tpu.vector_store %arg19[%c0_15, %c0_16], %34 {strides = array<i32>} : memref<16x32xf32, #tpu.memory_space<vmem>>, vector<16x8xf32>,
    %36 = vector.extract_strided_slice %12 {offsets = [0, 8], sizes = [16, 8], strides = [1, 1]} : vector<16x96xbf16> to vector<16x8xbf16>
    %37 = vector.shape_cast %36 : vector<16x8xbf16> to vector<2x8x8xbf16>
    %38 = vector.extract_strided_slice %12 {offsets = [0, 40], sizes = [16, 8], strides = [1, 1]} : vector<16x96xbf16> to vector<16x8xbf16>
    %39 = vector.shape_cast %38 : vector<16x8xbf16> to vector<2x8x8xbf16>
    %40 = vector.extract_strided_slice %12 {offsets = [0, 72], sizes = [16, 8], strides = [1, 1]} : vector<16x96xbf16> to vector<16x8xbf16>
    %41 = vector.shape_cast %40 : vector<16x8xbf16> to vector<2x8x8xbf16>
    "tpu.trace_start"() <{level = 10 : i32, message = "bqd,bkd->bqk"}> : () -> ()
    %cst_17 = arith.constant dense<0.000000e+00> : vector<2x8x8xf32>
    %42 = tpu.matmul %37, %39, %cst_17 {dimension_numbers = #tpu.dot_dimension_numbers<[2], [2], [1], [1], [0, 0, 0, 1, 1, 1], [0], [0]>} : vector<2x8x8xbf16>, vector<2x8x8xbf16>, vector<2x8x8xf32> -> vector<2x8x8xf32>
    "tpu.trace_stop"() : () -> ()
    %43 = arith.addf %42, %13 : vector<2x8x8xf32>
    %cst_18 = arith.constant dense<0xFF800000> : vector<2x8xf32>
    %44 = vector.multi_reduction <maximumf>, %43, %cst_18 [2] : vector<2x8x8xf32> to vector<2x8xf32>
    %45 = vector.shape_cast %44 : vector<2x8xf32> to vector<2x8x1xf32>
    %46 = vector.broadcast %45 : vector<2x8x1xf32> to vector<2x8x8xf32>
    %47 = arith.subf %43, %46 : vector<2x8x8xf32>
    %48 = math.exp %47 : vector<2x8x8xf32>
    %cst_19 = arith.constant dense<0.000000e+00> : vector<2x8xf32>
    %49 = vector.multi_reduction <add>, %48, %cst_19 [2] : vector<2x8x8xf32> to vector<2x8xf32>
    %50 = vector.shape_cast %49 : vector<2x8xf32> to vector<2x8x1xf32>
    %51 = tpu.reciprocal %50 {approx = true} : vector<2x8x1xf32> -> vector<2x8x1xf32>
    %52 = vector.broadcast %51 : vector<2x8x1xf32> to vector<2x8x8xf32>
    %53 = arith.mulf %48, %52 : vector<2x8x8xf32>
    %54 = arith.truncf %53 : vector<2x8x8xf32> to vector<2x8x8xbf16>
    "tpu.trace_start"() <{level = 10 : i32, message = "bqk,bkd->bqd"}> : () -> ()
    %cst_20 = arith.constant dense<0.000000e+00> : vector<2x8x8xf32>
    %55 = tpu.matmul %54, %41, %cst_20 {dimension_numbers = #tpu.dot_dimension_numbers<[2], [1], [1], [2], [0, 0, 0, 1, 1, 2], [0], [0]>} : vector<2x8x8xbf16>, vector<2x8x8xbf16>, vector<2x8x8xf32> -> vector<2x8x8xf32>
    "tpu.trace_stop"() : () -> ()
    %56 = vector.shape_cast %55 : vector<2x8x8xf32> to vector<16x8xf32>
    %c0_21 = arith.constant 0 : index
    %c8 = arith.constant 8 : index
    %57 = vector.load %arg19[%c0_21, %c8] : memref<16x32xf32, #tpu.memory_space<vmem>>, vector<16x8xf32>
    tpu.vector_store %arg19[%c0_21, %c8], %56 {strides = array<i32>} : memref<16x32xf32, #tpu.memory_space<vmem>>, vector<16x8xf32>,
    %58 = vector.extract_strided_slice %12 {offsets = [0, 16], sizes = [16, 8], strides = [1, 1]} : vector<16x96xbf16> to vector<16x8xbf16>
    %59 = vector.shape_cast %58 : vector<16x8xbf16> to vector<2x8x8xbf16>
    %60 = vector.extract_strided_slice %12 {offsets = [0, 48], sizes = [16, 8], strides = [1, 1]} : vector<16x96xbf16> to vector<16x8xbf16>
    %61 = vector.shape_cast %60 : vector<16x8xbf16> to vector<2x8x8xbf16>
    %62 = vector.extract_strided_slice %12 {offsets = [0, 80], sizes = [16, 8], strides = [1, 1]} : vector<16x96xbf16> to vector<16x8xbf16>
    %63 = vector.shape_cast %62 : vector<16x8xbf16> to vector<2x8x8xbf16>
    "tpu.trace_start"() <{level = 10 : i32, message = "bqd,bkd->bqk"}> : () -> ()
    %cst_22 = arith.constant dense<0.000000e+00> : vector<2x8x8xf32>
    %64 = tpu.matmul %59, %61, %cst_22 {dimension_numbers = #tpu.dot_dimension_numbers<[2], [2], [1], [1], [0, 0, 0, 1, 1, 1], [0], [0]>} : vector<2x8x8xbf16>, vector<2x8x8xbf16>, vector<2x8x8xf32> -> vector<2x8x8xf32>
    "tpu.trace_stop"() : () -> ()
    %65 = arith.addf %64, %13 : vector<2x8x8xf32>
    %cst_23 = arith.constant dense<0xFF800000> : vector<2x8xf32>
    %66 = vector.multi_reduction <maximumf>, %65, %cst_23 [2] : vector<2x8x8xf32> to vector<2x8xf32>
    %67 = vector.shape_cast %66 : vector<2x8xf32> to vector<2x8x1xf32>
    %68 = vector.broadcast %67 : vector<2x8x1xf32> to vector<2x8x8xf32>
    %69 = arith.subf %65, %68 : vector<2x8x8xf32>
    %70 = math.exp %69 : vector<2x8x8xf32>
    %cst_24 = arith.constant dense<0.000000e+00> : vector<2x8xf32>
    %71 = vector.multi_reduction <add>, %70, %cst_24 [2] : vector<2x8x8xf32> to vector<2x8xf32>
    %72 = vector.shape_cast %71 : vector<2x8xf32> to vector<2x8x1xf32>
    %73 = tpu.reciprocal %72 {approx = true} : vector<2x8x1xf32> -> vector<2x8x1xf32>
    %74 = vector.broadcast %73 : vector<2x8x1xf32> to vector<2x8x8xf32>
    %75 = arith.mulf %70, %74 : vector<2x8x8xf32>
    %76 = arith.truncf %75 : vector<2x8x8xf32> to vector<2x8x8xbf16>
    "tpu.trace_start"() <{level = 10 : i32, message = "bqk,bkd->bqd"}> : () -> ()
    %cst_25 = arith.constant dense<0.000000e+00> : vector<2x8x8xf32>
    %77 = tpu.matmul %76, %63, %cst_25 {dimension_numbers = #tpu.dot_dimension_numbers<[2], [1], [1], [2], [0, 0, 0, 1, 1, 2], [0], [0]>} : vector<2x8x8xbf16>, vector<2x8x8xbf16>, vector<2x8x8xf32> -> vector<2x8x8xf32>
    "tpu.trace_stop"() : () -> ()
    %78 = vector.shape_cast %77 : vector<2x8x8xf32> to vector<16x8xf32>
    %c0_26 = arith.constant 0 : index
    %c16 = arith.constant 16 : index
    %79 = vector.load %arg19[%c0_26, %c16] : memref<16x32xf32, #tpu.memory_space<vmem>>, vector<16x8xf32>
    tpu.vector_store %arg19[%c0_26, %c16], %78 {strides = array<i32>} : memref<16x32xf32, #tpu.memory_space<vmem>>, vector<16x8xf32>,
    %80 = vector.extract_strided_slice %12 {offsets = [0, 24], sizes = [16, 8], strides = [1, 1]} : vector<16x96xbf16> to vector<16x8xbf16>
    %81 = vector.shape_cast %80 : vector<16x8xbf16> to vector<2x8x8xbf16>
    %82 = vector.extract_strided_slice %12 {offsets = [0, 56], sizes = [16, 8], strides = [1, 1]} : vector<16x96xbf16> to vector<16x8xbf16>
    %83 = vector.shape_cast %82 : vector<16x8xbf16> to vector<2x8x8xbf16>
    %84 = vector.extract_strided_slice %12 {offsets = [0, 88], sizes = [16, 8], strides = [1, 1]} : vector<16x96xbf16> to vector<16x8xbf16>
    %85 = vector.shape_cast %84 : vector<16x8xbf16> to vector<2x8x8xbf16>
    "tpu.trace_start"() <{level = 10 : i32, message = "bqd,bkd->bqk"}> : () -> ()
    %cst_27 = arith.constant dense<0.000000e+00> : vector<2x8x8xf32>
    %86 = tpu.matmul %81, %83, %cst_27 {dimension_numbers = #tpu.dot_dimension_numbers<[2], [2], [1], [1], [0, 0, 0, 1, 1, 1], [0], [0]>} : vector<2x8x8xbf16>, vector<2x8x8xbf16>, vector<2x8x8xf32> -> vector<2x8x8xf32>
    "tpu.trace_stop"() : () -> ()
    %87 = arith.addf %86, %13 : vector<2x8x8xf32>
    %cst_28 = arith.constant dense<0xFF800000> : vector<2x8xf32>
    %88 = vector.multi_reduction <maximumf>, %87, %cst_28 [2] : vector<2x8x8xf32> to vector<2x8xf32>
    %89 = vector.shape_cast %88 : vector<2x8xf32> to vector<2x8x1xf32>
    %90 = vector.broadcast %89 : vector<2x8x1xf32> to vector<2x8x8xf32>
    %91 = arith.subf %87, %90 : vector<2x8x8xf32>
    %92 = math.exp %91 : vector<2x8x8xf32>
    %cst_29 = arith.constant dense<0.000000e+00> : vector<2x8xf32>
    %93 = vector.multi_reduction <add>, %92, %cst_29 [2] : vector<2x8x8xf32> to vector<2x8xf32>
    %94 = vector.shape_cast %93 : vector<2x8xf32> to vector<2x8x1xf32>
    %95 = tpu.reciprocal %94 {approx = true} : vector<2x8x1xf32> -> vector<2x8x1xf32>
    %96 = vector.broadcast %95 : vector<2x8x1xf32> to vector<2x8x8xf32>
    %97 = arith.mulf %92, %96 : vector<2x8x8xf32>
    %98 = arith.truncf %97 : vector<2x8x8xf32> to vector<2x8x8xbf16>
    "tpu.trace_start"() <{level = 10 : i32, message = "bqk,bkd->bqd"}> : () -> ()
    %cst_30 = arith.constant dense<0.000000e+00> : vector<2x8x8xf32>
    %99 = tpu.matmul %98, %85, %cst_30 {dimension_numbers = #tpu.dot_dimension_numbers<[2], [1], [1], [2], [0, 0, 0, 1, 1, 2], [0], [0]>} : vector<2x8x8xbf16>, vector<2x8x8xbf16>, vector<2x8x8xf32> -> vector<2x8x8xf32>
    "tpu.trace_stop"() : () -> ()
    %100 = vector.shape_cast %99 : vector<2x8x8xf32> to vector<16x8xf32>
    %c0_31 = arith.constant 0 : index
    %c24 = arith.constant 24 : index
    %101 = vector.load %arg19[%c0_31, %c24] : memref<16x32xf32, #tpu.memory_space<vmem>>, vector<16x8xf32>
    tpu.vector_store %arg19[%c0_31, %c24], %100 {strides = array<i32>} : memref<16x32xf32, #tpu.memory_space<vmem>>, vector<16x8xf32>,
    %c0_32 = arith.constant 0 : index
    %c0_33 = arith.constant 0 : index
    %102 = vector.load %arg19[%c0_32, %c0_33] : memref<16x32xf32, #tpu.memory_space<vmem>>, vector<16x32xf32>
    %103 = arith.truncf %102 : vector<16x32xf32> to vector<16x32xbf16>
    %c0_34 = arith.constant 0 : index
    %c0_35 = arith.constant 0 : index
    %c0_36 = arith.constant 0 : index
    %104 = vector.load %arg7[%c0_34, %c0_35, %c0_36] : memref<1x32x32xbf16, #tpu.memory_space<vmem>>, vector<1x32x32xbf16>
    %105 = vector.shape_cast %104 : vector<1x32x32xbf16> to vector<32x32xbf16>
    %cst_37 = arith.constant dense<0.000000e+00> : vector<16x32xf32>
    %106 = tpu.matmul %103, %105, %cst_37 {dimension_numbers = #tpu.dot_dimension_numbers<[1], [0], [0], [1], [0, 0, 1, 1], [], []>} : vector<16x32xbf16>, vector<32x32xbf16>, vector<16x32xf32> -> vector<16x32xf32>
    %c0_38 = arith.constant 0 : index
    %c0_39 = arith.constant 0 : index
    %c0_40 = arith.constant 0 : index
    %107 = vector.load %arg8[%c0_38, %c0_39, %c0_40] : memref<1x1x32xf32, #tpu.memory_space<vmem>>, vector<1x1x32xf32>
    %108 = vector.shape_cast %107 : vector<1x1x32xf32> to vector<1x32xf32>
    %109 = vector.broadcast %108 : vector<1x32xf32> to vector<16x32xf32>
    %110 = arith.addf %106, %109 : vector<16x32xf32>
    %111 = arith.addf %3, %110 : vector<16x32xf32>
    %c0_41 = arith.constant 0 : index
    %c0_42 = arith.constant 0 : index
    %c0_43 = arith.constant 0 : index
    %112 = vector.load %arg9[%c0_41, %c0_42, %c0_43] : memref<1x1x32xf32, #tpu.memory_space<vmem>>, vector<1x1x32xf32>
    %113 = vector.shape_cast %112 : vector<1x1x32xf32> to vector<1x32xf32>
    %c0_44 = arith.constant 0 : index
    %c0_45 = arith.constant 0 : index
    %c0_46 = arith.constant 0 : index
    %114 = vector.load %arg10[%c0_44, %c0_45, %c0_46] : memref<1x1x32xf32, #tpu.memory_space<vmem>>, vector<1x1x32xf32>
    %115 = vector.shape_cast %114 : vector<1x1x32xf32> to vector<1x32xf32>
    %cst_47 = arith.constant dense<0.000000e+00> : vector<16xf32>
    %116 = vector.multi_reduction <add>, %111, %cst_47 [1] : vector<16x32xf32> to vector<16xf32>
    %117 = vector.shape_cast %116 : vector<16xf32> to vector<16x1xf32>
    %cst_48 = arith.constant 3.200000e+01 : f32
    %118 = vector.broadcast %cst_48 : f32 to vector<16x1xf32>
    %119 = arith.divf %117, %118 : vector<16x1xf32>
    %120 = vector.broadcast %119 : vector<16x1xf32> to vector<16x32xf32>
    %121 = arith.subf %111, %120 : vector<16x32xf32>
    %122 = arith.mulf %121, %121 : vector<16x32xf32>
    %cst_49 = arith.constant dense<0.000000e+00> : vector<16xf32>
    %123 = vector.multi_reduction <add>, %122, %cst_49 [1] : vector<16x32xf32> to vector<16xf32>
    %124 = vector.shape_cast %123 : vector<16xf32> to vector<16x1xf32>
    %cst_50 = arith.constant 3.200000e+01 : f32
    %125 = vector.broadcast %cst_50 : f32 to vector<16x1xf32>
    %126 = arith.divf %124, %125 : vector<16x1xf32>
    %127 = vector.broadcast %119 : vector<16x1xf32> to vector<16x32xf32>
    %128 = arith.subf %111, %127 : vector<16x32xf32>
    %cst_51 = arith.constant 9.99999974E-6 : f32
    %129 = vector.broadcast %cst_51 : f32 to vector<16x1xf32>
    %130 = arith.addf %126, %129 : vector<16x1xf32>
    %131 = math.rsqrt %130 : vector<16x1xf32>
    %132 = vector.broadcast %131 : vector<16x1xf32> to vector<16x32xf32>
    %133 = arith.mulf %128, %132 : vector<16x32xf32>
    %134 = vector.broadcast %113 : vector<1x32xf32> to vector<16x32xf32>
    %135 = arith.mulf %133, %134 : vector<16x32xf32>
    %136 = vector.broadcast %115 : vector<1x32xf32> to vector<16x32xf32>
    %137 = arith.addf %135, %136 : vector<16x32xf32>
    %138 = arith.truncf %137 : vector<16x32xf32> to vector<16x32xbf16>
    %c0_52 = arith.constant 0 : index
    %c0_53 = arith.constant 0 : index
    %c0_54 = arith.constant 0 : index
    %139 = vector.load %arg11[%c0_52, %c0_53, %c0_54] : memref<1x32x64xbf16, #tpu.memory_space<vmem>>, vector<1x32x64xbf16>
    %140 = vector.shape_cast %139 : vector<1x32x64xbf16> to vector<32x64xbf16>
    %cst_55 = arith.constant dense<0.000000e+00> : vector<16x64xf32>
    %141 = tpu.matmul %138, %140, %cst_55 {dimension_numbers = #tpu.dot_dimension_numbers<[1], [0], [0], [1], [0, 0, 1, 1], [], []>} : vector<16x32xbf16>, vector<32x64xbf16>, vector<16x64xf32> -> vector<16x64xf32>
    %c0_56 = arith.constant 0 : index
    %c0_57 = arith.constant 0 : index
    %c0_58 = arith.constant 0 : index
    %142 = vector.load %arg12[%c0_56, %c0_57, %c0_58] : memref<1x1x64xf32, #tpu.memory_space<vmem>>, vector<1x1x64xf32>
    %143 = vector.shape_cast %142 : vector<1x1x64xf32> to vector<1x64xf32>
    %144 = vector.broadcast %143 : vector<1x64xf32> to vector<16x64xf32>
    %145 = arith.addf %141, %144 : vector<16x64xf32>
    %cst_59 = arith.constant 0.000000e+00 : f32
    %146 = vector.broadcast %cst_59 : f32 to vector<16x64xf32>
    %147 = arith.maximumf %145, %146 : vector<16x64xf32>
    %148 = arith.truncf %147 : vector<16x64xf32> to vector<16x64xbf16>
    %c0_60 = arith.constant 0 : index
    %c0_61 = arith.constant 0 : index
    %c0_62 = arith.constant 0 : index
    %149 = vector.load %arg13[%c0_60, %c0_61, %c0_62] : memref<1x64x32xbf16, #tpu.memory_space<vmem>>, vector<1x64x32xbf16>
    %150 = vector.shape_cast %149 : vector<1x64x32xbf16> to vector<64x32xbf16>
    %cst_63 = arith.constant dense<0.000000e+00> : vector<16x32xf32>
    %151 = tpu.matmul %148, %150, %cst_63 {dimension_numbers = #tpu.dot_dimension_numbers<[1], [0], [0], [1], [0, 0, 1, 1], [], []>} : vector<16x64xbf16>, vector<64x32xbf16>, vector<16x32xf32> -> vector<16x32xf32>
    %c0_64 = arith.constant 0 : index
    %c0_65 = arith.constant 0 : index
    %c0_66 = arith.constant 0 : index
    %152 = vector.load %arg14[%c0_64, %c0_65, %c0_66] : memref<1x1x32xf32, #tpu.memory_space<vmem>>, vector<1x1x32xf32>
    %153 = vector.shape_cast %152 : vector<1x1x32xf32> to vector<1x32xf32>
    %154 = vector.broadcast %153 : vector<1x32xf32> to vector<16x32xf32>
    %155 = arith.addf %151, %154 : vector<16x32xf32>
    %156 = arith.addf %137, %155 : vector<16x32xf32>
    %c0_67 = arith.constant 0 : index
    %c0_68 = arith.constant 0 : index
    %c0_69 = arith.constant 0 : index
    %157 = vector.load %arg15[%c0_67, %c0_68, %c0_69] : memref<1x1x32xf32, #tpu.memory_space<vmem>>, vector<1x1x32xf32>
    %158 = vector.shape_cast %157 : vector<1x1x32xf32> to vector<1x32xf32>
    %c0_70 = arith.constant 0 : index
    %c0_71 = arith.constant 0 : index
    %c0_72 = arith.constant 0 : index
    %159 = vector.load %arg16[%c0_70, %c0_71, %c0_72] : memref<1x1x32xf32, #tpu.memory_space<vmem>>, vector<1x1x32xf32>
    %160 = vector.shape_cast %159 : vector<1x1x32xf32> to vector<1x32xf32>
    %cst_73 = arith.constant dense<0.000000e+00> : vector<16xf32>
    %161 = vector.multi_reduction <add>, %156, %cst_73 [1] : vector<16x32xf32> to vector<16xf32>
    %162 = vector.shape_cast %161 : vector<16xf32> to vector<16x1xf32>
    %cst_74 = arith.constant 3.200000e+01 : f32
    %163 = vector.broadcast %cst_74 : f32 to vector<16x1xf32>
    %164 = arith.divf %162, %163 : vector<16x1xf32>
    %165 = vector.broadcast %164 : vector<16x1xf32> to vector<16x32xf32>
    %166 = arith.subf %156, %165 : vector<16x32xf32>
    %167 = arith.mulf %166, %166 : vector<16x32xf32>
    %cst_75 = arith.constant dense<0.000000e+00> : vector<16xf32>
    %168 = vector.multi_reduction <add>, %167, %cst_75 [1] : vector<16x32xf32> to vector<16xf32>
    %169 = vector.shape_cast %168 : vector<16xf32> to vector<16x1xf32>
    %cst_76 = arith.constant 3.200000e+01 : f32
    %170 = vector.broadcast %cst_76 : f32 to vector<16x1xf32>
    %171 = arith.divf %169, %170 : vector<16x1xf32>
    %172 = vector.broadcast %164 : vector<16x1xf32> to vector<16x32xf32>
    %173 = arith.subf %156, %172 : vector<16x32xf32>
    %cst_77 = arith.constant 9.99999974E-6 : f32
    %174 = vector.broadcast %cst_77 : f32 to vector<16x1xf32>
    %175 = arith.addf %171, %174 : vector<16x1xf32>
    %176 = math.rsqrt %175 : vector<16x1xf32>
    %177 = vector.broadcast %176 : vector<16x1xf32> to vector<16x32xf32>
    %178 = arith.mulf %173, %177 : vector<16x32xf32>
    %179 = vector.broadcast %158 : vector<1x32xf32> to vector<16x32xf32>
    %180 = arith.mulf %178, %179 : vector<16x32xf32>
    %181 = vector.broadcast %160 : vector<1x32xf32> to vector<16x32xf32>
    %182 = arith.addf %180, %181 : vector<16x32xf32>
    %c1_i32 = arith.constant 1 : i32
    %183 = arith.cmpi ne, %arg1, %c1_i32 : i32
    %184 = arith.extui %183 : i1 to i32
    %c0_i32_78 = arith.constant 0 : i32
    %185 = arith.cmpi ne, %184, %c0_i32_78 : i32
    scf.if %185 {
      %c0_81 = arith.constant 0 : index
      %c0_82 = arith.constant 0 : index
      %189 = vector.load %arg18[%c0_81, %c0_82] : memref<16x32xf32, #tpu.memory_space<vmem>>, vector<16x32xf32>
      tpu.vector_store %arg18[%c0_81, %c0_82], %182 {strides = array<i32>} : memref<16x32xf32, #tpu.memory_space<vmem>>, vector<16x32xf32>,
    } else {
    }
    %c1_i32_79 = arith.constant 1 : i32
    %186 = arith.cmpi eq, %arg1, %c1_i32_79 : i32
    %187 = arith.extui %186 : i1 to i32
    %c0_i32_80 = arith.constant 0 : i32
    %188 = arith.cmpi ne, %187, %c0_i32_80 : i32
    scf.if %188 {
      %189 = vector.shape_cast %182 : vector<16x32xf32> to vector<2x8x32xf32>
      %c0_81 = arith.constant 0 : index
      %c0_82 = arith.constant 0 : index
      %c0_83 = arith.constant 0 : index
      %190 = vector.load %arg17[%c0_81, %c0_82, %c0_83] : memref<2x8x32xf32, #tpu.memory_space<vmem>>, vector<2x8x32xf32>
      tpu.vector_store %arg17[%c0_81, %c0_82, %c0_83], %189 {strides = array<i32>} : memref<2x8x32xf32, #tpu.memory_space<vmem>>, vector<2x8x32xf32>,
    } else {
    }
    return
  }
  func.func @transform_0(%arg0: i32, %arg1: i32) -> (i32, i32, i32) {
    %c0_i32 = arith.constant 0 : i32
    %c0_i32_0 = arith.constant 0 : i32
    %c0_i32_1 = arith.constant 0 : i32
    return %arg0, %c0_i32, %c0_i32_0 : i32, i32, i32
  }
  func.func @transform_1(%arg0: i32, %arg1: i32) -> (i32, i32, i32) {
    %c0_i32 = arith.constant 0 : i32
    %c0_i32_0 = arith.constant 0 : i32
    %c0_i32_1 = arith.constant 0 : i32
    return %arg0, %c0_i32, %c0_i32_0 : i32, i32, i32
  }
  func.func @transform_2(%arg0: i32, %arg1: i32) -> (i32, i32) {
    %c0_i32 = arith.constant 0 : i32
    %c0_i32_0 = arith.constant 0 : i32
    %c0_i32_1 = arith.constant 0 : i32
    return %c0_i32, %c0_i32_0 : i32, i32
  }
  func.func @transform_3(%arg0: i32, %arg1: i32) -> (i32, i32, i32) {
    %c0_i32 = arith.constant 0 : i32
    %c0_i32_0 = arith.constant 0 : i32
    %c0_i32_1 = arith.constant 0 : i32
    return %arg1, %c0_i32, %c0_i32_0 : i32, i32, i32
  }
  func.func @transform_4(%arg0: i32, %arg1: i32) -> (i32, i32, i32) {
    %c0_i32 = arith.constant 0 : i32
    %c0_i32_0 = arith.constant 0 : i32
    %c0_i32_1 = arith.constant 0 : i32
    return %arg1, %c0_i32, %c0_i32_0 : i32, i32, i32
  }
  func.func @transform_5(%arg0: i32, %arg1: i32) -> (i32, i32, i32) {
    %c0_i32 = arith.constant 0 : i32
    %c0_i32_0 = arith.constant 0 : i32
    %c0_i32_1 = arith.constant 0 : i32
    return %arg1, %c0_i32, %c0_i32_0 : i32, i32, i32
  }
  func.func @transform_6(%arg0: i32, %arg1: i32) -> (i32, i32, i32) {
    %c0_i32 = arith.constant 0 : i32
    %c0_i32_0 = arith.constant 0 : i32
    %c0_i32_1 = arith.constant 0 : i32
    return %arg1, %c0_i32, %c0_i32_0 : i32, i32, i32
  }
  func.func @transform_7(%arg0: i32, %arg1: i32) -> (i32, i32, i32) {
    %c0_i32 = arith.constant 0 : i32
    %c0_i32_0 = arith.constant 0 : i32
    %c0_i32_1 = arith.constant 0 : i32
    return %arg1, %c0_i32, %c0_i32_0 : i32, i32, i32
  }
  func.func @transform_8(%arg0: i32, %arg1: i32) -> (i32, i32, i32) {
    %c0_i32 = arith.constant 0 : i32
    %c0_i32_0 = arith.constant 0 : i32
    %c0_i32_1 = arith.constant 0 : i32
    return %arg1, %c0_i32, %c0_i32_0 : i32, i32, i32
  }
  func.func @transform_9(%arg0: i32, %arg1: i32) -> (i32, i32, i32) {
    %c0_i32 = arith.constant 0 : i32
    %c0_i32_0 = arith.constant 0 : i32
    %c0_i32_1 = arith.constant 0 : i32
    return %arg1, %c0_i32, %c0_i32_0 : i32, i32, i32
  }
  func.func @transform_10(%arg0: i32, %arg1: i32) -> (i32, i32, i32) {
    %c0_i32 = arith.constant 0 : i32
    %c0_i32_0 = arith.constant 0 : i32
    %c0_i32_1 = arith.constant 0 : i32
    return %arg1, %c0_i32, %c0_i32_0 : i32, i32, i32
  }
  func.func @transform_11(%arg0: i32, %arg1: i32) -> (i32, i32, i32) {
    %c0_i32 = arith.constant 0 : i32
    %c0_i32_0 = arith.constant 0 : i32
    %c0_i32_1 = arith.constant 0 : i32
    return %arg1, %c0_i32, %c0_i32_0 : i32, i32, i32
  }
  func.func @transform_12(%arg0: i32, %arg1: i32) -> (i32, i32, i32) {
    %c0_i32 = arith.constant 0 : i32
    %c0_i32_0 = arith.constant 0 : i32
    %c0_i32_1 = arith.constant 0 : i32
    return %arg1, %c0_i32, %c0_i32_0 : i32, i32, i32
  }
  func.func @transform_13(%arg0: i32, %arg1: i32) -> (i32, i32, i32) {
    %c0_i32 = arith.constant 0 : i32
    %c0_i32_0 = arith.constant 0 : i32
    %c0_i32_1 = arith.constant 0 : i32
    return %arg1, %c0_i32, %c0_i32_0 : i32, i32, i32
  }
  func.func @transform_14(%arg0: i32, %arg1: i32) -> (i32, i32, i32) {
    %c0_i32 = arith.constant 0 : i32
    %c0_i32_0 = arith.constant 0 : i32
    %c0_i32_1 = arith.constant 0 : i32
    return %arg1, %c0_i32, %c0_i32_0 : i32, i32, i32
  }
  func.func @transform_15(%arg0: i32, %arg1: i32) -> (i32, i32, i32) {
    %c0_i32 = arith.constant 0 : i32
    %c0_i32_0 = arith.constant 0 : i32
    %c0_i32_1 = arith.constant 0 : i32
    return %arg0, %c0_i32, %c0_i32_0 : i32, i32, i32
  }
}

</mosaic_0001>

<bundles_post_ra>
// kernel: tpu_custom_call.1
= control target key start
LH: loop header
LB: loop body
LE: loop exit
PB: predicated region body
PF: predicated region fallthrough
CT: control target
= control target key end

     0   :  { %s3106_s0 = inlined_call_operand.vmem [shape: f32[4,8,32], index: 0, kind: input, shape index: {}]   ;;  %s3107_s1 = inlined_call_operand.hbm [shape: s32[4,1,8], index: 1, kind: input, shape index: {}]   ;;  %s3108_s2 = inlined_call_operand.hbm [shape: f32[8,32], index: 2, kind: input, shape index: {}]   ;;  %s3109_s3 = inlined_call_operand.vmem [shape: bf16[2,32,96], index: 3, kind: input, shape index: {}]   ;;  %s3110_s4 = inlined_call_operand.vmem [shape: f32[2,1,96], index: 4, kind: input, shape index: {}]   ;;  %s3111_s5 = inlined_call_operand.vmem [shape: bf16[2,32,32], index: 5, kind: input, shape index: {}]   ;;  %s3112_s6 = inlined_call_operand.vmem [shape: f32[2,1,32], index: 6, kind: input, shape index: {}]   ;;  %s3113_s7 = inlined_call_operand.hbm [shape: f32[2,1,32], index: 7, kind: input, shape index: {}]   ;;  %s3114_s8 = inlined_call_operand.vmem [shape: f32[2,1,32], index: 8, kind: input, shape index: {}]   ;;  %s3115_s9 = inlined_call_operand.hbm [shape: bf16[2,32,64], index: 9, kind: input, shape index: {}]   ;;  %s3116_s10 = inlined_call_operand.vmem [shape: f32[2,1,64], index: 10, kind: input, shape index: {}]   ;;  %s3117_s11 = inlined_call_operand.vmem [shape: bf16[2,64,32], index: 11, kind: input, shape index: {}]   ;;  %s3118_s12 = inlined_call_operand.vmem [shape: f32[2,1,32], index: 12, kind: input, shape index: {}]   ;;  %s3119_s13 = inlined_call_operand.hbm [shape: f32[2,1,32], index: 13, kind: input, shape index: {}]   ;;  %s3120_s14 = inlined_call_operand.vmem [shape: f32[2,1,32], index: 14, kind: input, shape index: {}]   ;;  %s3121_s15 = inlined_call_operand.hbm [shape: f32[4,8,32], index: 15, kind: output, shape index: {}]  }
   0x1   :  { %3138 = sst [smem:[#allocation33_spill]] %s3106_s0 }
   0x2   :  { %3139 = sst [smem:[#allocation34_spill]] %s3107_s1 }
   0x3   :  { %3140 = sst [smem:[#allocation35_spill]] %s3108_s2 }
   0x4   :  { %3141 = sst [smem:[#allocation36_spill]] %s3109_s3 }
   0x5   :  { %3142 = sst [smem:[#allocation37_spill]] %s3110_s4 }
   0x6   :  { %3143 = sst [smem:[#allocation38_spill]] %s3111_s5 }
   0x7   :  { %3144 = sst [smem:[#allocation39_spill]] %s3112_s6 }
   0x8   :  { %3145 = sst [smem:[#allocation40_spill]] %s3113_s7 }
   0x9   :  { %3146 = sst [smem:[#allocation41_spill]] %s3114_s8 }
   0xa   :  { %3147 = sst [smem:[#allocation42_spill]] %s3115_s9 }
   0xb   :  { %3148 = sst [smem:[#allocation43_spill]] %s3116_s10 }
   0xc   :  { %3149 = sst [smem:[#allocation44_spill]] %s3117_s11 }
   0xd   :  { %3150 = sst [smem:[#allocation45_spill]] %s3118_s12 }
   0xe   :  { %3151 = sst [smem:[#allocation46_spill]] %s3119_s13 }
   0xf   :  { %3152 = sst [smem:[#allocation47_spill]] %s3120_s14 }
  0x10   :  { %3153 = sst [smem:[#allocation48_spill]] %s3121_s15 }
  0x11   :  { %20 = vsyncpa [#allocation6], 0 }
  0x12   :  { %22 = vsyncpa [#allocation6 + $0x1], 0 }
  0x13   :  { %23 = vsyncpa [#allocation9], 0 }
  0x14   :  { %24 = vsyncpa [#allocation7], 0 }
  0x15   :  { %26 = vsyncpa [#allocation7 + $0x1], 0  ;;  %s2606_s18 = smov 0   ;;  %s2608_s19 = smov 0  }
  0x16   :  { %s2610_s20 = smov 0   ;;  %s2612_s21 = smov 0  }
  0x17   :  { %s2614_s22 = smov 0   ;;  %s2616_s23 = smov 0  }
  0x18   :  { %s2618_s24 = smov 0   ;;  %s2620_s25 = smov 0  }
  0x19   :  { %s2622_s26 = smov 0   ;;  %s2624_s27 = smov 0  }
  0x1a   :  { %s2626_s28 = smov 0  }
  0x1b LB: > { %3154 = sst [smem:[#allocation18_spill]] %s2465_s19  ;;  %s44_s29 = sadd.s32 1, %s2497_s27  ;;  %s2501_s28 = sphi %s2626_s28, %s32_s28   ;;  %s2497_s27 = sphi %s2624_s27, %s3216_s27   ;;  %s2493_s26 = sphi %s2622_s26, %s3215_s26   ;;  %s2489_s25 = sphi %s2620_s25, %s3214_s25   ;;  %s2485_s24 = sphi %s2618_s24, %s3213_s24   ;;  %s2481_s23 = sphi %s2616_s23, %s3212_s23   ;;  %s2477_s22 = sphi %s2614_s22, %s3211_s22   ;;  %s2473_s21 = sphi %s2612_s21, %s3210_s21   ;;  %s2469_s20 = sphi %s2610_s20, %s3209_s20   ;;  %s2465_s19 = sphi %s2608_s19, %s3208_s19   ;;  %s2461_s18 = sphi %s2606_s18, %s3207_s18  }
  0x1c   : > { %3155 = sst [smem:[#allocation19_spill]] %s2469_s20  ;;  %p84_p0 = scmp.ne.s32.totalorder %s2481_s23, %s2477_s22 }
  0x1d   : > { %3156 = sst [smem:[#allocation20_spill]] %s2473_s21  ;;  %p85_p1 = scmp.eq.s32.totalorder %s2501_s28, 0 }
  0x1e   : > { %3157 = sst [smem:[#allocation21_spill]] %s2477_s22  ;;  %p2057_p2 = scmp.lt.s32.totalorder %s2501_s28, 4 }
  0x1f   : > { %3158 = sst [smem:[#allocation22_spill]] %s2481_s23  ;;  %p86_p3 = por %p85_p1, %p84_p0 }
  0x20   : > { %3159 = sst [smem:[#allocation23_spill]] %s2493_s26  ;;  %s494_s16 = sand.u32 1, %s2501_s28  }
  0x21   : > { %3160 = sst [smem:[#allocation24_spill]] %s2497_s27  ;;  %s496_s17 = sand.u32 1, %s2481_s23  }
  0x22   : > { %3161 = sst [smem:[#allocation25_spill]] %s2501_s28  ;;  %s1920_s15 = sshll.u32 %s496_s17, 1 }
  0x23   : > { %s1921_s14 = sshll.u32 %s2497_s27, 1  ;;  %s3162_s1 = sld [smem:[#allocation34_spill]] }
  0x24   : > { %s498_s8 = scalar_lea.vmem [#allocation5], %s1920_s15  ;;  %p2040_p4 = pnand %p2057_p2, %p86_p3 }
  0x25   : > { %s505_s6 = sshll.u32 %s498_s8, 4  ;;  %s2680_s17 = scalar_lea.sflag [#allocation6], %s494_s16  ;;  %s506_s6 = int_to_ptr.vmem [resolvable:$true] %s505_s6 }
  0x26   : > { %s2503_s5 = smov 16   ;;  %s2504_s4 = smov 1  }
  0x27   : > { %s41_s11 = sadd.s32 1, %s2493_s26  ;;  %s228_s12 = sadd.s32 1, %s2469_s20 }
  0x28   : > { %p42_p5 = scmp.ge.s32.totalorder %s41_s11, 2  ;;  %p235_p6 = scmp.ne.s32.totalorder %s2469_s20, %s2465_s19 }
  0x29   : > { %s502_s10 = scalar_lea.hbm %s3162_s1, %s1921_s14  ;;  %s3163_s7 = sld [smem:[#allocation40_spill]] }
  0x2a   : > { %s503_s30 = sshll.u32 %s502_s10, 4  ;;  %s2688_s10 = sand.u32 1, %s2469_s20   ;;  %s504_s30 = int_to_ptr.hbm [resolvable:$true] %s503_s30 }
  0x2b   : > { %2042 = dma.hbm_to_vmem [thread:$0]  (!%p2040_p4), %s504_s30, 32, %s506_s6, %s2680_s17, %s2503_s5, %s2503_s5, %s2504_s4  }
  0x2c   : > { %s3218_s11 = smov (%p42_p5, %s41_s11), 0  ;;  %s3220_s29 = smov (!%p42_p5, %s44_s29), %s2497_s27 }
  0x2d   : > { %3164 = sst [smem:[#allocation26_spill]] %s3218_s11  ;;  %s225_s4 = ssub.s32 %s2493_s26, %s3218_s11 }
  0x2e   : > { %p237_p7 = por %p235_p6, %p85_p1  ;;  %p46_p8 = scmp.ge.s32.totalorder %s3220_s29, 2 }
  0x2f   : > { %s549_s15 = scalar_lea.hbm %s3163_s7, %s2493_s26  ;;  %p226_p9 = scmp.eq.s32.totalorder %s225_s4, 0 }
  0x30   : > { %s551_s5 = sshll.u32 %s549_s15, 4  ;;  %s3222_s29 = smov (%p46_p8, %s3220_s29), 0  ;;  %s552_s5 = int_to_ptr.hbm [resolvable:$true] %s551_s5 }
  0x31   : > { %3165 = sst [smem:[#allocation27_spill]] %s3222_s29  ;;  %s74_s30 = ssub.s32 %s2497_s27, %s3222_s29 }
  0x32   : > { %s2704_s6 = scalar_select %p226_p9, %s2469_s20, %s228_s12  }
  0x33   : > { %p75_p10 = scmp.eq.s32.totalorder %s74_s30, 0  ;;  %s546_s16 = scalar_lea.vmem [#allocation10], %s2688_s10 }
  0x34   : > { %3166 = sst [smem:[#allocation28_spill]] %s2704_s6  ;;  %s553_s8 = sshll.u32 %s546_s16, 4  ;;  %s554_s8 = int_to_ptr.vmem [resolvable:$true] %s553_s8 }
  0x35   : > { %p2711_p11 = pnand %p2057_p2, %p237_p7  ;;  %s3168_s15 = sadd.s32 1, %s2481_s23 }
  0x36   : > { %s2718_s12 = scalar_select %p75_p10, %s2481_s23, %s3168_s15  }
  0x37   : > { %s1922_s4 = sshll.u32 %s2688_s10, 4  ;;  %s2006_s30 = sshll.u32 %s2493_s26, 4 }
  0x38   : > { %3169 = sst [smem:[#allocation29_spill]] %s2718_s12  ;;  %s570_s16 = scalar_lea.vmem [#allocation11], %s1922_s4 }
  0x39   : > { %2045 = dma.hbm_to_vmem [thread:$0]  (!%p2711_p11), %s552_s5, 16, %s554_s8, %s2680_s17  }
  0x3a   : > { %s578_s1 = sshll.u32 %s570_s16, 4  ;;  %s3170_s9 = sld [smem:[#allocation42_spill]]  ;;  %s579_s1 = int_to_ptr.vmem [resolvable:$true] %s578_s1 }
  0x3b   : > { %s2505_s15 = smov 64   ;;  %s2506_s12 = smov 4  }
  0x3c   : > { %s2732_s6 = sadd.s32 4294967295, %s2501_s28   ;;  %s1916_s5 = sadd.s32 4294967294, %s2501_s28  }
  0x3d   : > { %p90_p12 = scmp.ne.s32.totalorder %s2477_s22, %s2473_s21  ;;  %p91_p13 = scmp.eq.s32.totalorder %s2732_s6, 0 }
  0x3e   : > { %p241_p1 = scmp.ne.s32.totalorder %s2465_s19, %s2461_s18  ;;  %p447_p2 = scmp.eq.s32.totalorder %s2732_s6, 3 }
  0x3f   : > { %p453_p3 = scmp.eq.s32.totalorder %s1916_s5, 3  ;;  %p2743_p4 = por %p91_p13, %p90_p12 }
  0x40   : > { %s575_s11 = scalar_lea.hbm %s3170_s9, %s2006_s30  ;;  %p2749_p5 = por %p241_p1, %p91_p13 }
  0x41   : > { %s576_s27 = sshll.u32 %s575_s11, 4  ;;  %p2756_p6 = por %p447_p2, %p84_p0  ;;  %s577_s27 = int_to_ptr.hbm [resolvable:$true] %s576_s27 }
  0x42   : > { %2048 = dma.hbm_to_vmem [thread:$0]  (!%p2711_p11), %s577_s27, 256, %s579_s1, %s2680_s17, %s2505_s15, %s2505_s15, %s2506_s12  }
  0x43   : > { %s3173_s27 = scalar_select %p2756_p6, 1, 0 }
  0x44   : > { %p2760_p7 = por %p453_p3, %p90_p12  ;;  %p1917_p8 = scmp.ge.s32.totalorder %s2501_s28, 1 }
  0x45   : > { %3174 = sst [smem:[#allocation30_spill]] %s3173_s27  ;;  %p460_p9 = scmp.lt.s32.totalorder %s2501_s28, 5 }
  0x46   : > { %s3175_s18 = scalar_select %p2760_p7, 1, 0 }
  0x47   : > { %s3177_s2 = sld [smem:[#allocation35_spill]]  ;;  %p2769_p10 = pnand %p1917_p8, %p460_p9 }
  0x48   : > { %3176 = sst [smem:[#allocation31_spill]] %s3175_s18  ;;  %s2507_s4 = smov [#allocation8]  }
  0x49   : > { %p2035_p0 = pneg %p2769_p10  ;;  %s474_s30 = sshll.u32 %s2507_s4, 4  ;;  %s475_s30 = int_to_ptr.vmem [resolvable:$true] %s474_s30 }
  0x4a   : > { %s3179_s13 = sld [smem:[#allocation46_spill]]  ;;  %s611_s11 = scalar_lea.vmem [#allocation12], %s2688_s10 }
  0x4b   : > { %p2036_p12 = pnand %p2035_p0, %p91_p13 }
  0x4d   : > { %s472_s8 = sshll.u32 %s3177_s2, 4  ;;  %s618_s2 = sshll.u32 %s611_s11, 4  ;;  %s473_s8 = int_to_ptr.hbm [resolvable:$true] %s472_s8  ;;  %s619_s2 = int_to_ptr.vmem [resolvable:$true] %s618_s2 }
  0x4e   : > { %2038 = dma.hbm_to_vmem [thread:$0]  (!%p2036_p12), %s473_s8, 128, %s475_s30, [#allocation9]  }
  0x4f   : > { %633 = sbr.rel (%p2769_p10) target bundleno = 2118 (0x846), region = 80 }
  0x50   : > { %s614_s5 = scalar_lea.hbm %s3179_s13, %s2493_s26 }
  0x51   : > { %s616_s29 = sshll.u32 %s614_s5, 4  ;;  %s617_s29 = int_to_ptr.hbm [resolvable:$true] %s616_s29 }
  0x52   : > { %2051 = dma.hbm_to_vmem [thread:$0]  (!%p2711_p11), %s617_s29, 16, %s619_s2, %s2680_s17  }
  0x54   : > { %s635_s4 = sand.u32 1, %s2732_s6   ;;  %s2789_s9 = sand.u32 1, %s2477_s22  }
  0x55   : > { %3180 = sst [smem:[#allocation32_spill]] %s2789_s9  ;;  %s1926_s16 = sshll.u32 %s2789_s9, 1 }
  0x56   : > { %s636_s15 = scalar_lea.sflag [#allocation6], %s635_s4  ;;  %s2792_s5 = scalar_lea.vmem [#allocation5], %s1926_s16 }
  0x57   : > { %2444 = dma.done.wait (%p2743_p4), %s636_s15, 32  }
  0x58   : > { %2446 = vsyncadd (%p2743_p4), %s636_s15, 4294967264 }
  0x59   : > { %2448 = dma.done.wait (%p91_p13), [#allocation9], 128  }
  0x5a   : > { %2450 = vsyncadd (%p91_p13), [#allocation9], 4294967168  ;;  %s2803_s2 = sand.u32 1, %s2465_s19  }
  0x5b   : > { %2452 = dma.done.wait (%p2749_p5), %s636_s15, 288  }
  0x5c   : > { %2454 = vsyncadd (%p2749_p5), %s636_s15, 4294967008  ;;  %s1928_s10 = sshll.u32 %s2803_s2, 4  ;;  %s1929_s14 = sshll.u32 %s2789_s9, 4 }
  0x5d   : > { %s1930_s6 = sshll.u32 %s2489_s25, 1  ;;  %p778_p13 = scmp.lt.s32.totalorder %s2485_s24, 1 }
  0x5e   : > { %p772_p11 = scmp.lt.s32.totalorder %s1930_s6, 3  ;;  %s3181_s0 = sld [smem:[#allocation33_spill]] }
  0x5f   : > { %s2815_s7 = scalar_select %p778_p13, %s2485_s24, 1 }
  0x60   : > { %s3224_s6 = smov (!%p772_p11, %s1930_s6), 3  ;;  %s3182_s3 = sld [smem:[#allocation36_spill]] }
  0x61   : > { %s1931_s1 = sshll.u32 %s3224_s6, 3  ;;  %s2007_s29 = sshll.u32 %s2815_s7, 4 }
  0x62   : > { %s3184_s20 = sld [smem:[#allocation38_spill]]  ;;  %s2009_s9 = sshll.u32 %s2815_s7, 5 }
  0x63   : > { %s3188_s15 = sld [smem:[#allocation45_spill]]  ;;  %s2864_s12 = scalar_lea.vmem [#allocation13], %s1929_s14 }
  0x64   : > { %s775_s30 = scalar_lea.vmem %s3181_s0, %s1931_s1  ;;  %s3186_s0 = sld [smem:[#allocation41_spill]] }
  0x65   : > { %s3189_s23 = sld [smem:[#allocation44_spill]]  ;;  %s2861_s1 = scalar_lea.vmem [#allocation11], %s1928_s10 }
  0x66   : > { %s2824_s16 = scalar_lea.vmem %s3182_s3, %s2007_s29  ;;  %s3187_s3 = sld [smem:[#allocation43_spill]] }
  0x67   : > { %s3190_s6 = sld [smem:[#allocation47_spill]]  ;;  %p1938_p1 = scmp.ne.s32.totalorder %s2485_s24, 0 }
  0x68   : > { %s2833_s19 = scalar_lea.vmem %s3184_s20, %s2007_s29 }
  0x69   : > { %s807_s26 = scalar_lea.vmem %s3188_s15, %s2815_s7  ;;  %816 = sbr.rel (%p1938_p1) target bundleno = 121 (0x79), region = 104 }
  0x6a   : > { %s796_s28 = scalar_lea.vmem %s3186_s0, %s2815_s7  ;;  %s672_s0 = scalar_lea.vmem [#allocation12], %s2803_s2 }
  0x6b   : > { %s2855_s29 = scalar_lea.vmem %s3189_s23, %s2009_s9 }
  0x6c   : > { %s799_s27 = scalar_lea.vmem %s3187_s3, %s2815_s7 }
  0x6d   : > { %s810_s8 = scalar_lea.vmem %s3190_s6, %s2815_s7 }
  0x6e   : > { %v817_v0 = vld [vmem:[%s775_s30] sm:$0xff]  ;;  %v819_v1 = vld [vmem:[#allocation8] sm:$0xff]  ;;  %vm822_vm0 = vcmask 261120   ;;  %v818_v2 = vld [vmem:[%s775_s30 + $0x8] sm:$0xff]  ;;  %v825_v3 = vlaneseq  ;;  %v2508_v10 = vmov 0   ;;  %vm846_vm5 = vcmask 64512  }
  0x6f   : > { %v820_v4 = vadd.f32 %v819_v1, %v817_v0  ;;  %v821_v5 = vadd.f32 %v819_v1, %v818_v2  ;;  %v830_v6 = vld [vmem:[%s2792_s5] sm:$0x1]  ;;  %v831_v7 = vld [vmem:[%s2792_s5 + $0x1] sm:$0x1]  ;;  %v2509_v15 = vmov 0.0  }
  0x70   : > { %v826_v8 = vshrl.u32 %v825_v3, 7  ;;  %v828_v9 = vand.u32 127, %v825_v3  ;;  %vm832_vm1 = vcmp.gt.s32.totalorder %v830_v6, 0  ;;  %vm833_vm2 = vcmp.gt.s32.totalorder %v831_v7, 0 }
  0x71   : > { %823 = vst.msk [vmem:[#allocation2] sm:$0xff] %vm822_vm0, %v820_v4  ;;  %v836_v11 = vsel %vm832_vm1, 1, %v2508_v10  ;;  %v837_v12 = vsel %vm833_vm2, 1, %v2508_v10 }
  0x72   : > { %824 = vst.msk [vmem:[#allocation2 + $0x8] sm:$0xff] %vm822_vm0, %v821_v5  ;;  %vm829_vm3 = vcmp.gt.s32.totalorder %v828_v9, %v826_v8  ;;  %v838_v13 = vperm.slane %v836_v11, 0  ;;  %v839_v14 = vperm.slane %v837_v12, 0 }
  0x74   : > { %vm840_vm4 = vcmp.eq.s32.totalorder %v838_v13, 1  ;;  %vm841_vm6 = vcmp.eq.s32.totalorder %v839_v14, 1 }
  0x75   : > { %vm842_vm7 = vmor %vm829_vm3, %vm840_vm4 }
  0x76   : > { %v844_v16 = vsel %vm842_vm7, -1e+30, %v2509_v15  ;;  %vm843_vm8 = vmor %vm829_vm3, %vm841_vm6 }
  0x77   : > { %847 = vst.msk [vmem:[#allocation4] sm:$0xff] %vm846_vm5, %v844_v16  ;;  %v845_v17 = vsel %vm843_vm8, -1e+30, %v2509_v15 }
  0x78   : > { %848 = vst.msk [vmem:[#allocation4 + $0x8] sm:$0xff] %vm846_vm5, %v845_v17 }
  0x79 PF: > { %v2011_v18 = vld [vmem:[%s2824_s16 + $0x8] sm:$0xff]  ;;  %v2010_v19 = vld [vmem:[%s2824_s16] sm:$0xff]  ;;  %vm872_vm9 = vcmask 261120   ;;  %s3191_s5 = sld [smem:[#allocation37_spill]]  ;;  %s2510_s14 = smov 120   ;;  %vm899_vm10 = vcmask 64512  }
  0x7a   : > { %v2871_v20 = vld [vmem:[#allocation2] sm:$0xff]  ;;  %v2873_v21 = vld [vmem:[#allocation2 + $0x8] sm:$0xff]  ;;  %882 = vmatpush.bf16.msra.mxu0 %v2011_v18  ;;  %s2511_s30 = smov 88   ;;  %s2512_s16 = smov 96   ;;  %vm972_vm11 = vcmask 1043456   ;;  %vm1132_vm12 = vcmask 130112  }
  0x7b   : > { %v851_v22 = vpack.c.bf16 %v2873_v21, %v2871_v20  ;;  %s2513_s11 = smov 112   ;;  %s2514_s4 = smov 80   ;;  %vm1255_vm13 = vcmask 195712   ;;  %vm1378_vm14 = vcmask 261312   ;;  %vm1563_vm6 = vcmask 523264  }
  0x7c   : > { %s2515_s17 = smov 72   ;;  %s2516_s13 = smov 104  }
  0x7d   : > { %s2517_s15 = smov 64   ;;  %s2518_s22 = smov 56  }
  0x7e   : > { %883 = vmatpush.bf16.msra.mxu0 %v2010_v19  ;;  %v892_v56 = vld [vmem:[#allocation4] sm:$0xff]  ;;  %s2519_s20 = smov 48   ;;  %s2520_s23 = smov 40  }
  0x7f   : > { %s3192_s10 = scalar_lea.vmem %s3191_s5, %s2815_s7  ;;  %v893_v1 = vld [vmem:[#allocation4 + $0x8] sm:$0xff]  ;;  %s2521_s18 = smov 8  }
  0x80   : > { %v2171_v23 = vld [vmem:[%s3192_s10] ss:$0 sm:$0xff]  ;;  %s2522_s21 = smov 16   ;;  %s2523_s6 = smov 24  }
  0x81   : > { %1947 = vmatmul.msk.bf16.vlgmr.msra.gmra.mxu0 %vm872_vm9, %v851_v22  ;;  %p1999_p2 = scmp.eq.s32.totalorder %s2485_s24, 1 }
  0xfe   : > { %v885_v24 = vpop.f32.mrf.mxu0 }
  0xff   : > { %v886_v25 = vadd.f32 %v2171_v23, %v885_v24 }
 0x101   : > { %v890_v26 = vpack.c.bf16 %v886_v25, %v886_v25 }
 0x103   : > { %v895_v27 = vunpack.c.l.b16 %v890_v26 }
 0x105   : > { %v2883_v28 = vpack.c.b16 %v895_v27, %v895_v27 }
 0x106   : > { %v887_v29 = vpop.f32.mrf.mxu0 }
 0x107   : > { %v888_v30 = vadd.f32 %v2171_v23, %v887_v29  ;;  %1012 = vrot.lane.b32.xlu2 %v2883_v28, %s2510_s14  ;;  %1014 = vrot.lane.b32.xlu1 %v2883_v28, %s2511_s30 }
 0x108   : > { %897 = vrot.lane.b32.xlu0 %v2883_v28, %s2512_s16 }
 0x109   : > { %v891_v31 = vpack.c.bf16 %v888_v30, %v888_v30 }
 0x10b   : > { %v920_v32 = vunpack.c.l.b16 %v891_v31 }
 0x10d   : > { %v2888_v33 = vpack.c.b16 %v920_v32, %v920_v32 }
 0x10f   : > { %1035 = vrot.lane.b32.xlu2 %v2888_v33, %s2510_s14  ;;  %1037 = vrot.lane.b32.xlu1 %v2888_v33, %s2511_s30 }
 0x110   : > { %922 = vrot.lane.b32.xlu0 %v2888_v33, %s2512_s16 }
 0x117   : > { %1135 = vrot.lane.b32.xlu2 %v2883_v28, %s2513_s11  ;;  %1160 = vrot.lane.b32.xlu1 %v2888_v33, %s2514_s4 }
 0x118   : > { %1137 = vrot.lane.b32.xlu0 %v2883_v28, %s2514_s4 }
 0x11f   : > { %1283 = vrot.lane.b32.xlu2 %v2888_v33, %s2515_s17  ;;  %1260 = vrot.lane.b32.xlu1 %v2883_v28, %s2515_s17 }
 0x120   : > { %1158 = vrot.lane.b32.xlu0 %v2888_v33, %s2513_s11 }
 0x127   : > { %1281 = vrot.lane.b32.xlu1 %v2888_v33, %s2516_s13 }
 0x128   : > { %1258 = vrot.lane.b32.xlu0 %v2883_v28, %s2516_s13 }
 0x161   : > { %v1013_v34 = vpop.permute.xlu2 %1012 }
 0x169   : > { %v1036_v39 = vpop.permute.xlu2 %1035 }
 0x171   : > { %v1136_v44 = vpop.permute.xlu2 %1135 }
 0x179   : > { %v1015_v35 = vpop.permute.xlu1 %1014  ;;  %v1284_v49 = vpop.permute.xlu2 %1283 }
 0x17a   : > { %v898_v36 = vpop.permute.xlu0 %897  ;;  %v1020_v37 = vsel %vm899_vm10, %v1015_v35, 0  ;;  %v1289_v52 = vsel %vm899_vm10, %v1284_v49, 0 }
 0x17b   : > { %v904_v38 = vsel %vm899_vm10, %v898_v36, 0  ;;  %1029 = vmatpush.bf16.xpose.msrb.mxu0 %v1020_v37 }
 0x17c   : > { %913 = vmatpush.bf16.xpose.msra.mxu1 %v904_v38 }
 0x181   : > { %v1038_v40 = vpop.permute.xlu1 %1037 }
 0x182   : > { %v923_v41 = vpop.permute.xlu0 %922  ;;  %1952 = vmatmul.msk.bf16.vlgmr.msrb.gmra.mxu0 %vm899_vm10, %v1013_v34  ;;  %v1043_v42 = vsel %vm899_vm10, %v1038_v40, 0 }
 0x183   : > { %1948 = vmatmul.msk.bf16.vlgmr.msra.gmra.mxu1 %vm899_vm10, %v890_v26  ;;  %v928_v43 = vsel %vm899_vm10, %v923_v41, 0 }
 0x184   : > { %937 = vmatpush.bf16.xpose.msra.mxu2 %v928_v43  ;;  %1052 = vmatpush.bf16.xpose.msrb.mxu1 %v1043_v42 }
 0x189   : > { %v1161_v45 = vpop.permute.xlu1 %1160 }
 0x18a   : > { %v1166_v46 = vsel %vm899_vm10, %v1161_v45, 0  ;;  %v1138_v47 = vpop.permute.xlu0 %1137 }
 0x18b   : > { %v1143_v48 = vsel %vm899_vm10, %v1138_v47, 0  ;;  %1949 = vmatmul.msk.bf16.vlgmr.msra.gmra.mxu2 %vm899_vm10, %v891_v31 }
 0x18c   : > { %1175 = vmatpush.bf16.xpose.msra.mxu1 %v1166_v46  ;;  %1152 = vmatpush.bf16.xpose.msra.mxu0 %v1143_v48 }
 0x191   : > { %v1261_v50 = vpop.permute.xlu1 %1260 }
 0x192   : > { %v1266_v51 = vsel %vm899_vm10, %v1261_v50, 0  ;;  %v1159_v53 = vpop.permute.xlu0 %1158 }
 0x193   : > { %1953 = vmatmul.msk.bf16.vlgmr.msrb.gmra.mxu1 %vm899_vm10, %v1036_v39  ;;  %1956 = vmatmul.msk.bf16.vlgmr.msra.gmra.mxu0 %vm899_vm10, %v1136_v44 }
 0x194   : > { %1298 = vmatpush.bf16.xpose.msrb.mxu1 %v1289_v52  ;;  %1275 = vmatpush.bf16.xpose.msrb.mxu0 %v1266_v51 }
 0x199   : > { %v1282_v55 = vpop.permute.xlu1 %1281 }
 0x19a   : > { %v1259_v54 = vpop.permute.xlu0 %1258 }
 0x1a3   : > { %1957 = vmatmul.msk.bf16.vlgmr.msra.gmra.mxu1 %vm899_vm10, %v1159_v53  ;;  %1960 = vmatmul.msk.bf16.vlgmr.msrb.gmra.mxu0 %vm899_vm10, %v1259_v54 }
 0x1b3   : > { %1961 = vmatmul.msk.bf16.vlgmr.msrb.gmra.mxu1 %vm899_vm10, %v1282_v55 }
 0x1ff   : > { %v1031_v57 = vpop.f32.mrf.mxu0 }
 0x200   : > { %v915_v58 = vpop.f32.mrf.mxu1  ;;  %v1032_v59 = vadd.f32 %v1031_v57, %v892_v56 }
 0x201   : > { %v916_v60 = vadd.f32 %v915_v58, %v892_v56 }
 0x202   : > { %v1058_v61 = vsel %vm899_vm10, %v1032_v59, -inf }
 0x203   : > { %1059 = vmax.xlane.f32.xlu1 %v1058_v61  ;;  %v943_v62 = vsel %vm899_vm10, %v916_v60, -inf }
 0x204   : > { %944 = vmax.xlane.f32.xlu2 %v943_v62 }
 0x207   : > { %v1033_v63 = vpop.f32.mrf.mxu0 }
 0x208   : > { %v917_v0 = vpop.f32.mrf.mxu1 }
 0x20e   : > { %v939_v2 = vpop.f32.mrf.mxu2 }
 0x20f   : > { %v940_v3 = vadd.f32 %v939_v2, %v893_v1 }
 0x210   : > { %v1054_v4 = vpop.f32.mrf.mxu1  ;;  %v1154_v5 = vpop.f32.mrf.mxu0 }
 0x211   : > { %v1055_v6 = vadd.f32 %v1054_v4, %v893_v1  ;;  %v2919_v7 = vadd.f32 %v1154_v5, %v892_v56  ;;  %v946_v8 = vsel %vm899_vm10, %v940_v3, -inf }
 0x212   : > { %947 = vmax.xlane.f32.xlu0 %v946_v8 }
 0x213   : > { %v1061_v9 = vsel %vm899_vm10, %v1055_v6, -inf  ;;  %v1181_v26 = vsel %vm899_vm10, %v2919_v7, -inf }
 0x214   : > { %1062 = vmax.xlane.f32.xlu2 %v1061_v9 }
 0x216   : > { %v941_v10 = vpop.f32.mrf.mxu2 }
 0x218   : > { %v1056_v11 = vpop.f32.mrf.mxu1  ;;  %v1156_v12 = vpop.f32.mrf.mxu0 }
 0x21c   : > { %989 = vrot.lane.b32.xlu1 %v2888_v33, %s2517_s15 }
 0x220   : > { %v1177_v13 = vpop.f32.mrf.mxu1  ;;  %v1277_v14 = vpop.f32.mrf.mxu0 }
 0x221   : > { %v1178_v22 = vadd.f32 %v1177_v13, %v893_v1  ;;  %v1278_v25 = vadd.f32 %v1277_v14, %v892_v56 }
 0x223   : > { %v1184_v24 = vsel %vm899_vm10, %v1178_v22, -inf  ;;  %v1304_v27 = vsel %vm899_vm10, %v1278_v25, -inf }
 0x224   : > { %1103 = vrot.lane.b32.xlu1 %v2888_v33, %s2518_s22 }
 0x226   : > { %1082 = vrot.lane.b32.xlu0 %v2883_v28, %s2518_s22 }
 0x228   : > { %v1179_v15 = vpop.f32.mrf.mxu1  ;;  %v1279_v16 = vpop.f32.mrf.mxu0 }
 0x22c   : > { %967 = vrot.lane.b32.xlu2 %v2883_v28, %s2517_s15 }
 0x230   : > { %v1300_v17 = vpop.f32.mrf.mxu1 }
 0x231   : > { %v1301_v19 = vadd.f32 %v1300_v17, %v893_v1 }
 0x233   : > { %v1307_v23 = vsel %vm899_vm10, %v1301_v19, -inf }
 0x238   : > { %v1302_v18 = vpop.f32.mrf.mxu1 }
 0x24e   : > { %1308 = vmax.xlane.f32.xlu1 %v1307_v23 }
 0x250   : > { %1185 = vmax.xlane.f32.xlu0 %v1184_v24 }
 0x255   : > { %1182 = vmax.xlane.f32.xlu2 %v1181_v26 }
 0x258   : > { %1305 = vmax.xlane.f32.xlu0 %v1304_v27 }
 0x276   : > { %v1060_v29 = vpop.xlane.xlu1 %1059 }
 0x277   : > { %v1064_v30 = vsub.f32 %v1032_v59, %v1060_v29  ;;  %v945_v31 = vpop.xlane.xlu2 %944 }
 0x278   : > { %v949_v32 = vsub.f32 %v916_v60, %v945_v31 }
 0x279   : > { %v1066_v34 = vmul.f32 1.442695, %v1064_v30 }
 0x27a   : > { %v951_v35 = vmul.f32 1.442695, %v949_v32 }
 0x27b   : > { %2179 = vpow2.f32 %v1066_v34 }
 0x27c   : > { %2181 = vpow2.f32 %v951_v35 }
 0x281   : > { %v2932_v36 = vpop.eup %2179 }
 0x282   : > { %v2934_v37 = vpop.eup %2181  ;;  %v1070_v38 = vsel %vm899_vm10, %v2932_v36, 0.0 }
 0x283   : > { %v955_v39 = vsel %vm899_vm10, %v2934_v37, 0.0  ;;  %1071 = vadd.xlane.f32.xlu0 %v1070_v38 }
 0x284   : > { %956 = vadd.xlane.f32.xlu1 %v955_v39 }
 0x285   : > { %v948_v40 = vpop.xlane.xlu0 %947 }
 0x286   : > { %v950_v41 = vsub.f32 %v940_v3, %v948_v40 }
 0x287   : > { %v1063_v42 = vpop.xlane.xlu2 %1062 }
 0x288   : > { %v953_v43 = vmul.f32 1.442695, %v950_v41  ;;  %v1065_v44 = vsub.f32 %v1055_v6, %v1063_v42 }
 0x28a   : > { %2183 = vpow2.f32 %v953_v43  ;;  %v1068_v45 = vmul.f32 1.442695, %v1065_v44 }
 0x28c   : > { %2185 = vpow2.f32 %v1068_v45 }
 0x28e   : > { %v990_v46 = vpop.permute.xlu1 %989 }
 0x28f   : > { %v968_v47 = vpop.permute.xlu2 %967  ;;  %v995_v48 = vsel %vm972_vm11, %v990_v46, 0 }
 0x290   : > { %v2941_v49 = vpop.eup %2183  ;;  %v974_v50 = vsel %vm972_vm11, %v968_v47, 0 }
 0x291   : > { %983 = vmatpush.bf16.msra.mxu3 %v974_v50  ;;  %v958_v51 = vsel %vm899_vm10, %v2941_v49, 0.0 }
 0x292   : > { %v2946_v52 = vpop.eup %2185  ;;  %959 = vadd.xlane.f32.xlu0 %v958_v51 }
 0x293   : > { %v1073_v53 = vsel %vm899_vm10, %v2946_v52, 0.0 }
 0x294   : > { %1074 = vadd.xlane.f32.xlu2 %v1073_v53 }
 0x295   : > { %1004 = vmatpush.bf16.msrb.mxu3 %v995_v48 }
 0x296   : > { %v1104_v56 = vpop.permute.xlu1 %1103 }
 0x297   : > { %v1109_v23 = vsel %vm972_vm11, %v1104_v56, 0 }
 0x298   : > { %v1083_v54 = vpop.permute.xlu0 %1082 }
 0x299   : > { %v1088_v55 = vsel %vm972_vm11, %v1083_v54, 0 }
 0x29a   : > { %1097 = vmatpush.bf16.msrb.mxu2 %v1088_v55 }
 0x29d   : > { %1226 = vrot.lane.b32.xlu1 %v2888_v33, %s2519_s20 }
 0x2ac   : > { %1205 = vrot.lane.b32.xlu2 %v2883_v28, %s2519_s20 }
 0x2c1   : > { %v1309_v57 = vpop.xlane.xlu1 %1308 }
 0x2c2   : > { %v1311_v58 = vsub.f32 %v1301_v19, %v1309_v57 }
 0x2c3   : > { %v1186_v59 = vpop.xlane.xlu0 %1185 }
 0x2c4   : > { %v1188_v60 = vsub.f32 %v1178_v22, %v1186_v59  ;;  %v1314_v62 = vmul.f32 1.442695, %v1311_v58 }
 0x2c6   : > { %v1191_v61 = vmul.f32 1.442695, %v1188_v60 }
 0x2c8   : > { %2187 = vpow2.f32 %v1191_v61  ;;  %v1183_v63 = vpop.xlane.xlu2 %1182 }
 0x2c9   : > { %v1187_v0 = vsub.f32 %v2919_v7, %v1183_v63  ;;  %2189 = vpow2.f32 %v1314_v62 }
 0x2cb   : > { %v1189_v1 = vmul.f32 1.442695, %v1187_v0  ;;  %v1306_v2 = vpop.xlane.xlu0 %1305 }
 0x2cc   : > { %v1310_v3 = vsub.f32 %v1278_v25, %v1306_v2 }
 0x2cd   : > { %2191 = vpow2.f32 %v1189_v1 }
 0x2ce   : > { %v2188_v4 = vpop.eup %2187  ;;  %v1312_v5 = vmul.f32 1.442695, %v1310_v3 }
 0x2cf   : > { %v1196_v6 = vsel %vm899_vm10, %v2188_v4, 0.0  ;;  %v2955_v8 = vpop.eup %2189 }
 0x2d0   : > { %2193 = vpow2.f32 %v1312_v5  ;;  %1197 = vadd.xlane.f32.xlu0 %v1196_v6  ;;  %v1319_v11 = vsel %vm899_vm10, %v2955_v8, 0.0 }
 0x2d3   : > { %v2192_v9 = vpop.eup %2191 }
 0x2d4   : > { %v1193_v10 = vsel %vm899_vm10, %v2192_v9, 0.0 }
 0x2d5   : > { %1194 = vadd.xlane.f32.xlu1 %v1193_v10  ;;  %1320 = vadd.xlane.f32.xlu2 %v1319_v11  ;;  %v2013_v11 = vld [vmem:[%s2833_s19 + $0x8] sm:$0xff] }
 0x2d6   : > { %v2194_v7 = vpop.eup %2193  ;;  %1413 = vmatpush.bf16.msra.mxu0 %v2013_v11 }
 0x2d7   : > { %v1316_v12 = vsel %vm899_vm10, %v2194_v7, 0.0 }
 0x2d8   : > { %1317 = vadd.xlane.f32.xlu0 %v1316_v12 }
 0x2ec   : > { %1328 = vrot.lane.b32.xlu0 %v2883_v28, %s2520_s23 }
 0x2ee   : > { %1349 = vrot.lane.b32.xlu1 %v2888_v33, %s2520_s23 }
 0x2f6   : > { %v1072_v13 = vpop.xlane.xlu0 %1071 }
 0x2f7   : > { %v957_v14 = vpop.xlane.xlu1 %956  ;;  %2195 = vrcp.f32 %v1072_v13 }
 0x2f8   : > { %2197 = vrcp.f32 %v957_v14 }
 0x2fd   : > { %v2196_v15 = vpop.eup %2195 }
 0x2fe   : > { %v2198_v16 = vpop.eup %2197  ;;  %v1078_v17 = vmul.f32 %v2196_v15, %v2932_v36 }
 0x2ff   : > { %v963_v18 = vmul.f32 %v2198_v16, %v2934_v37 }
 0x300   : > { %v1080_v19 = vpack.c.bf16 %v1078_v17, %v1078_v17 }
 0x301   : > { %v965_v22 = vpack.c.bf16 %v963_v18, %v963_v18 }
 0x302   : > { %1954 = vmatmul.msk.bf16.vlgmr.msrb.gmra.mxu2 %vm899_vm10, %v1080_v19 }
 0x303   : > { %1950 = vmatmul.msk.bf16.vlgmr.msra.gmra.mxu3 %vm899_vm10, %v965_v22 }
 0x304   : > { %1118 = vmatpush.bf16.msra.mxu3 %v1109_v23 }
 0x305   : > { %v960_v28 = vpop.xlane.xlu0 %959 }
 0x306   : > { %2199 = vrcp.f32 %v960_v28 }
 0x307   : > { %v1075_v33 = vpop.xlane.xlu2 %1074 }
 0x308   : > { %2201 = vrcp.f32 %v1075_v33 }
 0x30c   : > { %v2200_v24 = vpop.eup %2199 }
 0x30d   : > { %v964_v25 = vmul.f32 %v2200_v24, %v2941_v49 }
 0x30e   : > { %v2202_v32 = vpop.eup %2201 }
 0x30f   : > { %v1206_v26 = vpop.permute.xlu2 %1205  ;;  %v1227_v29 = vpop.permute.xlu1 %1226  ;;  %v966_v30 = vpack.c.bf16 %v964_v25, %v964_v25  ;;  %v1079_v34 = vmul.f32 %v2202_v32, %v2946_v52 }
 0x310   : > { %v1211_v27 = vsel %vm972_vm11, %v1206_v26, 0  ;;  %v1232_v31 = vsel %vm972_vm11, %v1227_v29, 0  ;;  %v2524_v29 = vmov 32.0  }
 0x311   : > { %1220 = vmatpush.bf16.msra.mxu2 %v1211_v27  ;;  %v1081_v35 = vpack.c.bf16 %v1079_v34, %v1079_v34 }
 0x313   : > { %1951 = vmatmul.msk.bf16.vlgmr.msrb.gmra.mxu3 %vm899_vm10, %v966_v30 }
 0x314   : > { %1241 = vmatpush.bf16.msrb.mxu3 %v1232_v31 }
 0x323   : > { %1955 = vmatmul.msk.bf16.vlgmr.msra.gmra.mxu3 %vm899_vm10, %v1081_v35 }
 0x343   : > { %v1198_v36 = vpop.xlane.xlu0 %1197 }
 0x344   : > { %2203 = vrcp.f32 %v1198_v36 }
 0x348   : > { %v1195_v37 = vpop.xlane.xlu1 %1194  ;;  %v1321_v43 = vpop.xlane.xlu2 %1320 }
 0x349   : > { %2205 = vrcp.f32 %v1195_v37 }
 0x34a   : > { %v2204_v38 = vpop.eup %2203  ;;  %2207 = vrcp.f32 %v1321_v43 }
 0x34b   : > { %v1202_v39 = vmul.f32 %v2204_v38, %v2188_v4  ;;  %v1318_v45 = vpop.xlane.xlu0 %1317 }
 0x34c   : > { %2209 = vrcp.f32 %v1318_v45  ;;  %v2015_v45 = vld [vmem:[%s2861_s1 + $0x8] sm:$0xff] }
 0x34d   : > { %v1204_v40 = vpack.c.bf16 %v1202_v39, %v1202_v39  ;;  %2211 = vrcp.f32 %v2524_v29  ;;  %1516 = vmatpush.bf16.msra.mxu1 %v2015_v45 }
 0x34f   : > { %1959 = vmatmul.msk.bf16.vlgmr.msrb.gmra.mxu3 %vm899_vm10, %v1204_v40  ;;  %v2206_v41 = vpop.eup %2205 }
 0x350   : > { %v1201_v42 = vmul.f32 %v2206_v41, %v2192_v9  ;;  %v2208_v46 = vpop.eup %2207 }
 0x351   : > { %v1325_v49 = vmul.f32 %v2208_v46, %v2955_v8 }
 0x352   : > { %v1203_v44 = vpack.c.bf16 %v1201_v42, %v1201_v42  ;;  %v2210_v47 = vpop.eup %2209 }
 0x353   : > { %v1324_v50 = vmul.f32 %v2210_v47, %v2194_v7  ;;  %v1327_v54 = vpack.c.bf16 %v1325_v49, %v1325_v49  ;;  %v2012_v7 = vld [vmem:[%s2833_s19] sm:$0xff]  ;;  %s3193_s19 = sld [smem:[#allocation39_spill]]  ;;  %v2212_v30 = vpop.eup %2211 }
 0x354   : > { %1958 = vmatmul.msk.bf16.vlgmr.msra.gmra.mxu2 %vm899_vm10, %v1203_v44  ;;  %1414 = vmatpush.bf16.msra.mxu0 %v2012_v7  ;;  %v1432_v31 = vmul.f32 32.0, %v2212_v30  ;;  %vm1436_vm15 = vweird.f32 %v2212_v30  ;;  %v2014_v49 = vld [vmem:[%s2861_s1] sm:$0xff]  ;;  %s3195_s1 = scalar_lea.vmem [#allocation10], %s2803_s2 }
 0x355   : > { %v1326_v55 = vpack.c.bf16 %v1324_v50, %v1324_v50  ;;  %1517 = vmatpush.bf16.msra.mxu1 %v2014_v49 }
 0x356   : > { %v1433_v32 = vsub.f32 1.0, %v1432_v31 }
 0x358   : > { %v1434_v34 = vmul.f32 %v2212_v30, %v1433_v32 }
 0x359   : > { %s3194_s5 = scalar_lea.vmem %s3193_s19, %s2815_s7 }
 0x35a   : > { %v2172_v19 = vld [vmem:[%s3194_s5] ss:$0 sm:$0xff]  ;;  %v1435_v35 = vadd.f32 %v2212_v30, %v1434_v34 }
 0x35e   : > { %v1329_v48 = vpop.permute.xlu0 %1328 }
 0x35f   : > { %v1334_v51 = vsel %vm972_vm11, %v1329_v48, 0 }
 0x360   : > { %v1350_v52 = vpop.permute.xlu1 %1349  ;;  %1343 = vmatpush.bf16.msrb.mxu2 %v1334_v51 }
 0x361   : > { %v1355_v53 = vsel %vm972_vm11, %v1350_v52, 0 }
 0x362   : > { %1364 = vmatpush.bf16.msra.mxu3 %v1355_v53 }
 0x364   : > { %1962 = vmatmul.msk.bf16.vlgmr.msrb.gmra.mxu2 %vm899_vm10, %v1326_v55 }
 0x365   : > { %1963 = vmatmul.msk.bf16.vlgmr.msra.gmra.mxu3 %vm899_vm10, %v1327_v54 }
 0x385   : > { %v1099_v56 = vpop.f32.mrf.mxu2 }
 0x386   : > { %v985_v57 = vpop.f32.mrf.mxu3  ;;  %1126 = vrot.lane.b32.xlu0 %v1099_v56, %s2521_s18 }
 0x387   : > { %1010 = vst.msk [vmem:[#allocation3] sm:$0xff] %vm899_vm10, %v985_v57 }
 0x38d   : > { %v1101_v58 = vpop.f32.mrf.mxu2 }
 0x38e   : > { %v987_v59 = vpop.f32.mrf.mxu3 }
 0x396   : > { %v1006_v60 = vpop.f32.mrf.mxu3 }
 0x397   : > { %1011 = vst.msk [vmem:[#allocation3 + $0x8] sm:$0xff] %vm899_vm10, %v1006_v60 }
 0x39e   : > { %v1008_v61 = vpop.f32.mrf.mxu3 }
 0x3a6   : > { %v1120_v62 = vpop.f32.mrf.mxu3 }
 0x3a7   : > { %1128 = vrot.lane.b32.xlu1 %v1120_v62, %s2521_s18 }
 0x3ae   : > { %v1122_v63 = vpop.f32.mrf.mxu3 }
 0x3d2   : > { %v1243_v0 = vpop.f32.mrf.mxu3 }
 0x3d3   : > { %1251 = vrot.lane.b32.xlu1 %v1243_v0, %s2522_s21 }
 0x3d7   : > { %v1222_v1 = vpop.f32.mrf.mxu2 }
 0x3d8   : > { %1249 = vrot.lane.b32.xlu0 %v1222_v1, %s2522_s21  ;;  %v2173_v1 = vld [vmem:[%s3195_s1] ss:$0 sm:$0xff] }
 0x3da   : > { %v1245_v2 = vpop.f32.mrf.mxu3 }
 0x3df   : > { %v1224_v3 = vpop.f32.mrf.mxu2 }
 0x3e7   : > { %v1345_v4 = vpop.f32.mrf.mxu2 }
 0x3e8   : > { %v1366_v5 = vpop.f32.mrf.mxu3  ;;  %1372 = vrot.lane.b32.xlu2 %v1345_v4, %s2523_s6 }
 0x3e9   : > { %1374 = vrot.lane.b32.xlu0 %v1366_v5, %s2523_s6  ;;  %v2174_v5 = vld [vmem:[%s796_s28] ss:$0 sm:$0xff] }
 0x3ef   : > { %v1347_v6 = vpop.f32.mrf.mxu2 }
 0x3f0   : > { %v1368_v8 = vpop.f32.mrf.mxu3 }
 0x3f8   : > { %v1127_v9 = vpop.permute.xlu0 %1126 }
 0x3f9   : > { %1133 = vst.msk [vmem:[#allocation3] sm:$0xff] %vm1132_vm12, %v1127_v9 }
 0x419   : > { %v1129_v10 = vpop.permute.xlu1 %1128 }
 0x41a   : > { %1134 = vst.msk [vmem:[#allocation3 + $0x8] sm:$0xff] %vm1132_vm12, %v1129_v10 }
 0x442   : > { %v1373_v14 = vpop.permute.xlu2 %1372 }
 0x445   : > { %v1252_v12 = vpop.permute.xlu1 %1251 }
 0x446   : > { %1257 = vst.msk [vmem:[#allocation3 + $0x8] sm:$0xff] %vm1255_vm13, %v1252_v12  ;;  %v2019_v12 = vld [vmem:[%s2855_s29 + $0x18] sm:$0xff] }
 0x447   : > { %1571 = vmatpush.bf16.msra.mxu2 %v2019_v12 }
 0x44a   : > { %v1250_v13 = vpop.permute.xlu0 %1249 }
 0x44b   : > { %1256 = vst.msk [vmem:[#allocation3] sm:$0xff] %vm1255_vm13, %v1250_v13  ;;  %v2018_v13 = vld [vmem:[%s2855_s29 + $0x10] sm:$0xff] }
 0x44c   : > { %1379 = vst.msk [vmem:[#allocation3] sm:$0xff] %vm1378_vm14, %v1373_v14  ;;  %1572 = vmatpush.bf16.msra.mxu2 %v2018_v13  ;;  %v2017_v14 = vld [vmem:[%s2855_s29 + $0x8] sm:$0xff] }
 0x450   : > { %1573 = vmatpush.bf16.msra.mxu2 %v2017_v14 }
 0x453   : > { %v1381_v16 = vld [vmem:[#allocation3] sm:$0xff] }
 0x45b   : > { %v1375_v15 = vpop.permute.xlu0 %1374 }
 0x45c   : > { %1380 = vst.msk [vmem:[#allocation3 + $0x8] sm:$0xff] %vm1378_vm14, %v1375_v15  ;;  %v2016_v15 = vld [vmem:[%s2855_s29] sm:$0xff] }
 0x45d   : > { %1574 = vmatpush.bf16.msra.mxu2 %v2016_v15 }
 0x463   : > { %v1382_v17 = vld [vmem:[#allocation3 + $0x8] sm:$0xff] }
 0x464   : > { %v1383_v18 = vpack.c.bf16 %v1382_v17, %v1381_v16  ;;  %v2175_v17 = vld [vmem:[%s799_s27] ss:$0 sm:$0xff] }
 0x466   : > { %1972 = vmatmul.msk.bf16.vlgmr.msra.gmra.mxu0 %vm872_vm9, %v1383_v18 }
 0x4e3   : > { %v1416_v22 = vpop.f32.mrf.mxu0 }
 0x4e4   : > { %v1417_v23 = vadd.f32 %v2172_v19, %v1416_v22 }
 0x4e6   : > { %v1421_v28 = vadd.f32 %v1417_v23, %v2871_v20  ;;  %v2997_v20 = vsel %vm1436_vm15, %v2212_v30, %v1435_v35 }
 0x4e8   : > { %v1425_v33 = vsel %vm872_vm9, %v1421_v28, 0.0 }
 0x4e9   : > { %1426 = vadd.xlane.f32.xlu1 %v1425_v33 }
 0x4eb   : > { %v1418_v24 = vpop.f32.mrf.mxu0 }
 0x4ec   : > { %v1419_v25 = vadd.f32 %v2172_v19, %v1418_v24  ;;  %v2176_v24 = vld [vmem:[%s807_s26] ss:$0 sm:$0xff] }
 0x4ee   : > { %v1422_v26 = vadd.f32 %v1419_v25, %v2873_v21 }
 0x4f0   : > { %v1428_v27 = vsel %vm872_vm9, %v1422_v26, 0.0 }
 0x4f1   : > { %1429 = vadd.xlane.f32.xlu0 %v1428_v27 }
 0x55c   : > { %v1427_v36 = vpop.xlane.xlu1 %1426 }
 0x55d   : > { %v1438_v37 = vmul.f32 %v2997_v20, %v1427_v36 }
 0x55f   : > { %v1440_v38 = vsub.f32 %v1421_v28, %v1438_v37 }
 0x561   : > { %v1442_v21 = vmul.f32 %v1440_v38, %v1440_v38 }
 0x563   : > { %v1444_v39 = vsel %vm872_vm9, %v1442_v21, 0.0 }
 0x564   : > { %v1430_v40 = vpop.xlane.xlu0 %1429  ;;  %1445 = vadd.xlane.f32.xlu2 %v1444_v39 }
 0x565   : > { %v1439_v41 = vmul.f32 %v2997_v20, %v1430_v40 }
 0x567   : > { %v1441_v42 = vsub.f32 %v1422_v26, %v1439_v41 }
 0x569   : > { %v1443_v43 = vmul.f32 %v1441_v42, %v1441_v42 }
 0x56b   : > { %v1447_v44 = vsel %vm872_vm9, %v1443_v43, 0.0 }
 0x56c   : > { %1448 = vadd.xlane.f32.xlu1 %v1447_v44 }
 0x5d7   : > { %v1446_v46 = vpop.xlane.xlu2 %1445 }
 0x5d8   : > { %v1450_v47 = vmul.f32 %v1446_v46, %v2997_v20 }
 0x5da   : > { %v1452_v48 = vadd.f32 1e-05, %v1450_v47 }
 0x5dc   : > { %2213 = vrsqrt.f32 %v1452_v48  ;;  %vm1460_vm1 = vweird.f32 %v1452_v48 }
 0x5df   : > { %v1449_v50 = vpop.xlane.xlu1 %1448 }
 0x5e0   : > { %v1451_v51 = vmul.f32 %v1449_v50, %v2997_v20 }
 0x5e2   : > { %v2214_v52 = vpop.eup %2213  ;;  %v1453_v53 = vadd.f32 1e-05, %v1451_v51 }
 0x5e3   : > { %v1455_v54 = vmul.f32 %v2214_v52, %v1452_v48  ;;  %vm1461_vm0 = vweird.f32 %v2214_v52 }
 0x5e4   : > { %2215 = vrsqrt.f32 %v1453_v53  ;;  %vm1462_vm2 = vmor %vm1460_vm1, %vm1461_vm0  ;;  %vm1470_vm4 = vweird.f32 %v1453_v53 }
 0x5e5   : > { %v1456_v55 = vmul.f32 %v2214_v52, %v1455_v54 }
 0x5e7   : > { %v1457_v56 = vmul.f32 0.5, %v1456_v55 }
 0x5e9   : > { %v1458_v57 = vsub.f32 1.5, %v1457_v56 }
 0x5ea   : > { %v2216_v58 = vpop.eup %2215 }
 0x5eb   : > { %v1459_v59 = vmul.f32 %v2214_v52, %v1458_v57  ;;  %v1465_v60 = vmul.f32 %v2216_v58, %v1453_v53  ;;  %vm1471_vm3 = vweird.f32 %v2216_v58 }
 0x5ec   : > { %vm1472_vm5 = vmor %vm1470_vm4, %vm1471_vm3 }
 0x5ed   : > { %v1466_v61 = vmul.f32 %v2216_v58, %v1465_v60  ;;  %v1463_v62 = vsel %vm1462_vm2, %v2214_v52, %v1459_v59 }
 0x5ee   : > { %v1474_v2 = vmul.f32 %v1463_v62, %v1440_v38 }
 0x5ef   : > { %v1467_v63 = vmul.f32 0.5, %v1466_v61 }
 0x5f0   : > { %v1479_v6 = vmul.f32 %v2173_v1, %v1474_v2 }
 0x5f1   : > { %v1468_v0 = vsub.f32 1.5, %v1467_v63 }
 0x5f2   : > { %v1484_v10 = vadd.f32 %v2174_v5, %v1479_v6 }
 0x5f3   : > { %v1469_v3 = vmul.f32 %v2216_v58, %v1468_v0 }
 0x5f5   : > { %v1473_v4 = vsel %vm1472_vm5, %v2216_v58, %v1469_v3  ;;  %v2177_v58 = vld [vmem:[%s672_s0] ss:$0 sm:$0xff] }
 0x5f6   : > { %v1475_v8 = vmul.f32 %v1473_v4, %v1441_v42 }
 0x5f8   : > { %v1480_v9 = vmul.f32 %v2173_v1, %v1475_v8 }
 0x5fa   : > { %v1485_v11 = vadd.f32 %v2174_v5, %v1480_v9 }
 0x5fc   : > { %v1486_v7 = vpack.c.bf16 %v1485_v11, %v1484_v10 }
 0x5fe   : > { %1981 = vmatmul.msk.bf16.vlgmr.msra.gmra.mxu1 %vm872_vm9, %v1486_v7 }
 0x67b   : > { %v1519_v16 = vpop.f32.mrf.mxu1 }
 0x67c   : > { %v1520_v18 = vadd.f32 %v2175_v17, %v1519_v16 }
 0x67e   : > { %v1524_v23 = vmax.f32 %v1520_v18, 0.0 }
 0x683   : > { %v1521_v19 = vpop.f32.mrf.mxu1 }
 0x684   : > { %v1522_v22 = vadd.f32 %v2175_v17, %v1521_v19 }
 0x686   : > { %v1525_v28 = vmax.f32 %v1522_v22, 0.0 }
 0x688   : > { %v1526_v33 = vpack.c.bf16 %v1525_v28, %v1524_v23 }
 0x68a   : > { %1998 = vmatmul.msk.bf16.vlgmr.msra.gmra.mxu2 %vm1563_vm6, %v1526_v33 }
 0x70d   : > { %v1576_v25 = vpop.f32.mrf.mxu2 }
 0x70e   : > { %v1577_v26 = vadd.f32 %v2176_v24, %v1576_v25 }
 0x710   : > { %v1581_v27 = vadd.f32 %v1577_v26, %v1484_v10 }
 0x712   : > { %v1585_v29 = vsel %vm872_vm9, %v1581_v27, 0.0 }
 0x713   : > { %1586 = vadd.xlane.f32.xlu0 %v1585_v29 }
 0x715   : > { %v1578_v30 = vpop.f32.mrf.mxu2 }
 0x716   : > { %v1579_v31 = vadd.f32 %v2176_v24, %v1578_v30 }
 0x718   : > { %v1582_v32 = vadd.f32 %v1579_v31, %v1485_v11 }
 0x71a   : > { %v1588_v34 = vsel %vm872_vm9, %v1582_v32, 0.0 }
 0x71b   : > { %1589 = vadd.xlane.f32.xlu1 %v1588_v34 }
 0x786   : > { %v1587_v35 = vpop.xlane.xlu0 %1586 }
 0x787   : > { %v1591_v36 = vmul.f32 %v1587_v35, %v2997_v20 }
 0x789   : > { %v1593_v37 = vsub.f32 %v1581_v27, %v1591_v36 }
 0x78b   : > { %v1595_v38 = vmul.f32 %v1593_v37, %v1593_v37 }
 0x78d   : > { %v1597_v21 = vsel %vm872_vm9, %v1595_v38, 0.0 }
 0x78e   : > { %v1590_v39 = vpop.xlane.xlu1 %1589  ;;  %1598 = vadd.xlane.f32.xlu0 %v1597_v21 }
 0x78f   : > { %v1592_v40 = vmul.f32 %v1590_v39, %v2997_v20 }
 0x791   : > { %v1594_v41 = vsub.f32 %v1582_v32, %v1592_v40 }
 0x793   : > { %v1596_v42 = vmul.f32 %v1594_v41, %v1594_v41 }
 0x795   : > { %v1600_v43 = vsel %vm872_vm9, %v1596_v42, 0.0 }
 0x796   : > { %1601 = vadd.xlane.f32.xlu1 %v1600_v43 }
 0x801   : > { %v1599_v44 = vpop.xlane.xlu0 %1598 }
 0x802   : > { %v1603_v45 = vmul.f32 %v1599_v44, %v2997_v20 }
 0x804   : > { %v1605_v46 = vadd.f32 1e-05, %v1603_v45 }
 0x806   : > { %2217 = vrsqrt.f32 %v1605_v46  ;;  %vm1613_vm8 = vweird.f32 %v1605_v46 }
 0x809   : > { %v1602_v47 = vpop.xlane.xlu1 %1601 }
 0x80a   : > { %v1604_v48 = vmul.f32 %v1602_v47, %v2997_v20  ;;  %v2178_v20 = vld [vmem:[%s810_s8] ss:$0 sm:$0xff] }
 0x80c   : > { %v2218_v49 = vpop.eup %2217  ;;  %v1606_v50 = vadd.f32 1e-05, %v1604_v48 }
 0x80d   : > { %v1608_v51 = vmul.f32 %v2218_v49, %v1605_v46  ;;  %vm1614_vm7 = vweird.f32 %v2218_v49 }
 0x80e   : > { %2219 = vrsqrt.f32 %v1606_v50  ;;  %vm1615_vm10 = vmor %vm1613_vm8, %vm1614_vm7  ;;  %vm1623_vm12 = vweird.f32 %v1606_v50 }
 0x80f   : > { %v1609_v52 = vmul.f32 %v2218_v49, %v1608_v51 }
 0x811   : > { %v1610_v53 = vmul.f32 0.5, %v1609_v52 }
 0x813   : > { %v1611_v54 = vsub.f32 1.5, %v1610_v53 }
 0x814   : > { %v2220_v55 = vpop.eup %2219 }
 0x815   : > { %v1612_v56 = vmul.f32 %v2218_v49, %v1611_v54  ;;  %v1618_v57 = vmul.f32 %v2220_v55, %v1606_v50  ;;  %vm1624_vm11 = vweird.f32 %v2220_v55 }
 0x816   : > { %vm1625_vm13 = vmor %vm1623_vm12, %vm1624_vm11 }
 0x817   : > { %v1616_v59 = vsel %vm1615_vm10, %v2218_v49, %v1612_v56  ;;  %v1619_v60 = vmul.f32 %v2220_v55, %v1618_v57 }
 0x818   : > { %v1627_v61 = vmul.f32 %v1616_v59, %v1593_v37 }
 0x819   : > { %v1620_v62 = vmul.f32 0.5, %v1619_v60 }
 0x81a   : > { %v1632_v63 = vmul.f32 %v2177_v58, %v1627_v61 }
 0x81b   : > { %v1621_v0 = vsub.f32 1.5, %v1620_v62 }
 0x81c   : > { %v1637_v1 = vadd.f32 %v2178_v20, %v1632_v63 }
 0x81d   : > { %v1622_v2 = vmul.f32 %v2220_v55, %v1621_v0 }
 0x81f   : > { %v1626_v3 = vsel %vm1625_vm13, %v2220_v55, %v1622_v2 }
 0x820   : > { %v1628_v4 = vmul.f32 %v1626_v3, %v1594_v41  ;;  %1642 = sbr.rel (%p1999_p2) target bundleno = 2087 (0x827), region = 108 }
 0x822   : > { %v1633_v5 = vmul.f32 %v2177_v58, %v1628_v4 }
 0x824   : > { %v1638_v6 = vadd.f32 %v2178_v20, %v1633_v5 }
 0x825   : > { %1643 = vst.msk [vmem:[#allocation2] sm:$0xff] %vm872_vm9, %v1637_v1 }
 0x826   : > { %1644 = vst.msk [vmem:[#allocation2 + $0x8] sm:$0xff] %vm872_vm9, %v1638_v6 }
 0x827 PF: > { %p2000_p3 = scmp.ne.s32.totalorder %s2485_s24, 1 }
 0x829   : > { %1648 = sbr.rel (%p2000_p3) target bundleno = 2096 (0x830), region = 112 }
 0x82e   : > { %1649 = vst.msk [vmem:[%s2864_s12] sm:$0xff] %vm872_vm9, %v1637_v1 }
 0x82f   : > { %1650 = vst.msk [vmem:[%s2864_s12 + $0x8] sm:$0xff] %vm872_vm9, %v1638_v6 }
 0x830 PF: > { %s3200_s2 = sld [smem:[#allocation32_spill]]  ;;  %s2020_s8 = sshll.u32 %s2489_s25, 4 }
 0x831   : > { %s3202_s22 = sld [smem:[#allocation48_spill]]  ;;  %s1664_s23 = sshll.u32 %s2864_s12, 4  ;;  %s1665_s23 = int_to_ptr.vmem [resolvable:$true] %s1664_s23 }
 0x836   : > { %s1652_s21 = scalar_lea.sflag [#allocation7], %s3200_s2 }
 0x837   : > { %s3203_s6 = smov %s3202_s22  ;;  %s1663_s20 = scalar_lea.hbm %s3202_s22, %s2020_s8 }
 0x838   : > { %s1666_s24 = sshll.u32 %s1663_s20, 4  ;;  %s2391_s25 = scalar_lea.hbm %s3203_s6, 32  ;;  %s1667_s24 = int_to_ptr.hbm [resolvable:$true] %s1666_s24 }
 0x839   : > { %s2385_s3 = sshra.s32 %s1667_s24, 4  ;;  %s2386_s3 = int_to_ptr.hbm [resolvable:$true] %s2385_s3 }
 0x83a   : > { %s2387_s9 = scalar_lea.hbm %s2386_s3, 16  ;;  %p2392_p9 = scmp.lt.s32.totalorder %s2386_s3, %s3203_s6 }
 0x83b   : > { %p2388_p4 = scmp.ne.s32.totalorder %s2386_s3, %s2387_s9  ;;  %p2393_p10 = scmp.lt.s32.totalorder %s2391_s25, %s2387_s9 }
 0x83d   : > { %p2389_p5 = pnand %p2388_p4, %p2756_p6  ;;  %p2394_p0 = por %p2393_p10, %p2392_p9 }
 0x83f   : > { %p2390_p8 = pneg %p2389_p5 }
 0x841   : > { %p2395_p12 = pnand %p2394_p0, %p2390_p8 }
 0x843   : > { %2398 = shalt.err (!%p2395_p12)
}
 0x844   : > { %s2525_s12 = smov 128  }
 0x845   : > { %2033 = dma.vmem_to_hbm [thread:$0]  (%p2756_p6), %s1665_s23, 256, %s1667_s24, %s1652_s21, %s2525_s12, %s2525_s12, %s2521_s18  }
 0x846 PF: > { %s3204_s14 = sld [smem:[#allocation25_spill]] }
 0x847   : > { %s3205_s30 = sld [smem:[#allocation20_spill]] }
 0x84c   : > { %p2059_p11 = scmp.ge.s32.totalorder %s3204_s14, 2 }
 0x84d   : > { %s1681_s16 = sand.u32 1, %s3205_s30  }
 0x84e   : > { %p2053_p13 = pnand %p2059_p11, %p2760_p7  ;;  %s1682_s11 = scalar_lea.sflag [#allocation7], %s1681_s16 }
 0x850   : > { %p2054_p1 = pneg %p2053_p13 }
 0x852   : > { %2456 = dma.done.wait (%p2054_p1), %s1682_s11, 256  }
 0x853   : > { %2458 = vsyncadd (%p2054_p1), %s1682_s11, 4294967040  ;;  %s32_s28 = sadd.s32 1, %s3204_s14   ;;  %s3207_s18 = sld [smem:[#allocation18_spill]] }
 0x854   : > { %p29_p2 = scmp.ge.s32.totalorder %s32_s28, 6   ;;  %s3208_s19 = sld [smem:[#allocation19_spill]] }
 0x855   : > { %s3209_s20 = sld [smem:[#allocation28_spill]] }
 0x856   : > { %s3210_s21 = sld [smem:[#allocation21_spill]] }
 0x857   : > { %s3211_s22 = sld [smem:[#allocation22_spill]] }
 0x858   : > { %s3212_s23 = sld [smem:[#allocation29_spill]]  ;;  %31 = sbr.rel (!%p29_p2) target bundleno = 27 (0x1b), region = 204 }
 0x859   : > { %s3213_s24 = sld [smem:[#allocation23_spill]] }
 0x85a   : > { %s3214_s25 = sld [smem:[#allocation24_spill]] }
 0x85b   : > { %s3215_s26 = sld [smem:[#allocation26_spill]] }
 0x85c   : > { %s3216_s27 = sld [smem:[#allocation27_spill]] }
 0x85d   :  { %1688 = vsyncpa [#allocation6], 1 }
 0x85e   :  { %1690 = vsyncpa [#allocation6 + $0x1], 1 }
 0x85f   :  { %1691 = vsyncpa [#allocation9], 1 }
 0x860   :  { %1692 = vsyncpa [#allocation7], 1 }
 0x861   :  { %1694 = vsyncpa [#allocation7 + $0x1], 1 }

</bundles_post_ra>
